<compile_context>
chip_gen: v6e
topology: v6e:2x2x1
jax: 0.10.0
libtpu: 0.0.40
codegen_flags: <defaults>
</compile_context>

<pallas_src>
import math

import jax
import jax.numpy as jnp
from jax import lax
from jax.experimental import pallas as pl
from jax.experimental.pallas import tpu as pltpu


def _round_up(x, m):
    return ((x + m - 1) // m) * m


# -----------------------------------------------------------------------------
# Pallas kernel: fused modulars.Attention + Classifier
# -----------------------------------------------------------------------------
def _attn_classifier_kernel(v_ref, q_ref, mask_ref,
                            wv_ref, bv_ref, wq_ref, bq_ref, wx_ref, bx_ref,
                            w11_ref, b11_ref, w12_ref, b12_ref,
                            w2_ref, b2_ref, w3_ref, b3_ref,
                            out_ref):
    f32, bf16 = jnp.float32, jnp.bfloat16
    v = v_ref[...]                                   # (TB, N, Dv) bf16
    q = q_ref[...]                                   # (TB, Dh)    bf16
    TB, N, Dv = v.shape
    G, M = wx_ref.shape

    # ---- Attention: FCNet(relu) projections: bf16 MXU, f32 accumulation ----
    pv = jnp.maximum(
        jnp.dot(v.reshape(TB * N, Dv), wv_ref[...],
                preferred_element_type=f32) + bv_ref[...], 0.0)      # (TB*N, M)
    pq = jnp.maximum(
        jnp.dot(q, wq_ref[...], preferred_element_type=f32)
        + bq_ref[...], 0.0)                                          # (TB, M)

    joint = (pv.reshape(TB, N, M) * pq[:, None, :]).astype(bf16)     # (TB, N, M)

    # ---- attention logits directly in lane-dense (TB, G, N) layout ----
    wx_b = jnp.broadcast_to(wx_ref[...], (TB, G, M))                 # bf16
    s = jnp.einsum('bgm,bnm->bgn', wx_b, joint,
                   preferred_element_type=f32)                       # (TB, G, N)
    s = s + bx_ref[...][None] + mask_ref[...][None]                  # bias + pad mask

    # softmax over objects (lane axis); reciprocal goes to the EUP slot
    s = s - jnp.max(s, axis=-1, keepdims=True)
    e = jnp.exp(s)
    att = e * pl.reciprocal(jnp.sum(e, axis=-1, keepdims=True), approx=True)

    # ---- attention-weighted pooling as one batched MXU contraction ----
    pooled = jnp.einsum('bgn,bnd->bgd', att.astype(bf16), v,
                        preferred_element_type=f32)                  # (TB, G, Dv)
    h_out = pooled.reshape(TB, G * Dv).astype(bf16)                  # glimpse concat

    # ---- Classifier (dropout == identity in eval mode) ----
    x = jnp.dot(h_out, w11_ref[...], preferred_element_type=f32) + b11_ref[...]
    y = jnp.dot(q, w12_ref[...], preferred_element_type=f32) + b12_ref[...]
    z = x * y                                        # lin11(h) * lin12(q)
    z = jnp.maximum(
        jnp.dot(z.astype(bf16), w2_ref[...], preferred_element_type=f32)
        + b2_ref[...], 0.0)                          # FCNet relu
    out_ref[...] = (jnp.dot(z.astype(bf16), w3_ref[...],
                            preferred_element_type=f32)
                    + b3_ref[...])                   # (TB, C_pad)


def attention_classifier(v, q_out, params, *, tile_b=8):
    """v: (B, N, Dv) f32, q_out: (B, Dh) f32 -> (B, num_classes) f32."""
    B, N, Dv = v.shape
    Dh = q_out.shape[-1]
    G, M = params["wx"].shape
    num_classes = params["w3"].shape[1]
    bf16 = jnp.bfloat16

    N_pad = _round_up(N, 8)           # sublane-aligned objects (mask the rest)
    B_pad = _round_up(B, tile_b)      # whole batch tiles
    C_pad = _round_up(num_classes, 128)  # lane-dense output stores

    v_p = jnp.pad(v.astype(bf16), ((0, B_pad - B), (0, N_pad - N), (0, 0)))
    q_p = jnp.pad(q_out.astype(bf16), ((0, B_pad - B), (0, 0)))
    obj_mask = jnp.where(jnp.arange(N_pad) < N, 0.0, -1e30).astype(
        jnp.float32).reshape(1, N_pad)
    w3_p = jnp.pad(params["w3"], ((0, 0), (0, C_pad - num_classes)))
    b3_p = jnp.pad(params["b3"], ((0, 0), (0, C_pad - num_classes)))

    args = (v_p, q_p, obj_mask,
            params["wv"], params["bv"], params["wq"], params["bq"],
            params["wx"], params["bx"],
            params["w11"], params["b11"], params["w12"], params["b12"],
            params["w2"], params["b2"], w3_p, b3_p)

    def tiled(shape):                  # batch-tiled blocks (pipelined)
        nd = len(shape)
        return pl.BlockSpec((tile_b,) + tuple(shape[1:]),
                            lambda i, _nd=nd: (i,) + (0,) * (_nd - 1))

    def resident(shape):               # VMEM-resident across grid steps
        nd = len(shape)
        return pl.BlockSpec(tuple(shape), lambda i, _nd=nd: (0,) * _nd)

    in_specs = [tiled(v_p.shape), tiled(q_p.shape)] + \
               [resident(a.shape) for a in args[2:]]
    out_spec = tiled((B_pad, C_pad))

    # VMEM budget: double-buffered batch tiles + the resident weight set.
    resident_bytes = sum(int(a.size) * a.dtype.itemsize for a in args[2:])
    tile_bytes = (tile_b * N_pad * Dv + tile_b * Dh) * 2 + tile_b * C_pad * 4
    vmem_limit = max(8 * 1024 * 1024,
                     4 * tile_bytes + 4 * resident_bytes + (1 << 20))

    out = pl.pallas_call(
        _attn_classifier_kernel,
        out_shape=jax.ShapeDtypeStruct((B_pad, C_pad), jnp.float32),
        grid=(B_pad // tile_b,),
        in_specs=in_specs,
        out_specs=out_spec,
        compiler_params=pltpu.CompilerParams(
            dimension_semantics=("parallel",),   # v7x megacore batch sharding
            vmem_limit_bytes=int(vmem_limit)),
    )(*args)
    return out[:B, :num_classes]


# -----------------------------------------------------------------------------
# BiGRU question encoder (sequential recurrence -> plain JAX glue).
# Input projection hoisted out of the scan into one big matmul.
# -----------------------------------------------------------------------------
def bigru_encode(w_emb, q_len, gru_fwd, gru_bwd):
    # w_emb: (T, B, dim_word)
    T, B, Dw = w_emb.shape
    ts = jnp.arange(T)

    def run(direction_params, reverse):
        wih, whh, bih, bhh = direction_params
        H2 = whh.shape[1]
        # hoisted input projection: one (T*B, Dw) @ (Dw, 3H2) matmul
        gi_all = (w_emb.reshape(T * B, Dw) @ wih.T + bih).reshape(T, B, 3 * H2)

        def step(h, inp):
            gi, t = inp
            gh = h @ whh.T + bhh
            ir, iz, inn = jnp.split(gi, 3, axis=-1)
            hr, hz, hn = jnp.split(gh, 3, axis=-1)
            r = jax.nn.sigmoid(ir + hr)
            z = jax.nn.sigmoid(iz + hz)
            n = jnp.tanh(inn + r * hn)
            h_new = (1.0 - z) * n + z * h
            valid = (t < q_len)[:, None]             # packed-sequence masking
            return jnp.where(valid, h_new, h), None

        h0 = jnp.zeros((B, H2), jnp.float32)
        h_final, _ = lax.scan(step, h0, (gi_all, ts), reverse=reverse)
        return h_final

    h_f = run(gru_fwd, reverse=False)
    h_b = run(gru_bwd, reverse=True)
    return jnp.concatenate([h_f, h_b], axis=-1)      # (B, dim_hidden)


# -----------------------------------------------------------------------------
# Net.forward
# -----------------------------------------------------------------------------
def net_forward(params, q, v, e_s, e_e, e_mask, e_lable, edge, r_mask,
                q_mask, q_len):
    del e_s, e_e, e_mask, e_lable, edge, r_mask      # unused by Net.forward
    qT = q.T                                         # q.permute(1, 0) -> (T, B)
    w_emb = params["token_embedding"][qT]            # (T, B, dim_word)
    q_out = bigru_encode(w_emb, q_len,
                         params["gru_fwd"], params["gru_bwd"])   # (B, dim_hidden)
    answer = attention_classifier(v, q_out, params)  # (B, num_classes)
    loss_time = jnp.zeros_like(q_mask, dtype=jnp.float32).mean()
    return answer, loss_time


# -----------------------------------------------------------------------------
# Deterministic parameter construction
# -----------------------------------------------------------------------------
def init_params(key, *, num_token, dim_word, dim_hidden, dim_vision,
                mid_size, glimpses, num_classes):
    keys = iter(jax.random.split(key, 32))
    bf16 = jnp.bfloat16

    def w(shape, dtype=jnp.float32, scale=0.1):
        return (scale * jax.random.normal(next(keys), shape)).astype(dtype)

    H2 = dim_hidden // 2
    return dict(
        token_embedding=w((num_token, dim_word)),
        gru_fwd=(w((3 * H2, dim_word)), w((3 * H2, H2)),
                 w((3 * H2,)), w((3 * H2,))),
        gru_bwd=(w((3 * H2, dim_word)), w((3 * H2, H2)),
                 w((3 * H2,)), w((3 * H2,))),
        # modulars.Attention (bf16 matmul weights, f32 biases)
        wv=w((dim_vision, mid_size), bf16), bv=w((1, mid_size)),
        wq=w((dim_hidden, mid_size), bf16), bq=w((1, mid_size)),
        wx=w((glimpses, mid_size), bf16),   bx=w((glimpses, 1)),
        # Classifier
        w11=w((glimpses * dim_vision, mid_size), bf16), b11=w((1, mid_size)),
        w12=w((dim_hidden, mid_size), bf16),            b12=w((1, mid_size)),
        w2=w((mid_size, mid_size), bf16),               b2=w((1, mid_size)),
        w3=w((mid_size, num_classes), bf16),            b3=w((1, num_classes)),
    )


# -----------------------------------------------------------------------------
if __name__ == "__main__":
    B, T, N = 16, 8, 8
    dim_word, dim_hidden, dim_vision = 16, 32, 32
    mid_size, glimpses = 32, 2
    num_token, num_classes = 50, 10

    key = jax.random.PRNGKey(0)
    kp, kq, kv, kl = jax.random.split(key, 4)
    params = init_params(kp, num_token=num_token, dim_word=dim_word,
                         dim_hidden=dim_hidden, dim_vision=dim_vision,
                         mid_size=mid_size, glimpses=glimpses,
                         num_classes=num_classes)

    q = jax.random.randint(kq, (B, T), 0, num_token, dtype=jnp.int32)
    v = (0.1 * jax.random.normal(kv, (B, N, dim_vision))).astype(jnp.float32)
    q_len = jax.random.randint(kl, (B,), 3, T + 1, dtype=jnp.int32)
    q_mask = (jnp.arange(T)[None, :] < q_len[:, None]).astype(jnp.float32)
    # graph inputs are unused by Net.forward; kept for signature parity
    e_s = e_e = e_mask = e_lable = edge = r_mask = None

    answer, loss_time = net_forward(params, q, v, e_s, e_e, e_mask, e_lable,
                                    edge, r_mask, q_mask, q_len)
    jax.block_until_ready((answer, loss_time))
    assert answer.shape == (B, num_classes)
    assert answer.dtype == jnp.float32
    assert bool(jnp.isfinite(answer).all())
    assert float(loss_time) == 0.0
    print("KERNEL_OK")
</pallas_src>

<mosaic_0001>
module attributes {stable_mosaic.version = 11 : i64} {
  func.func @_attn_classifier_kernel(%arg0: i32, %arg1: memref<8x8x32xbf16, #tpu.memory_space<vmem>>, %arg2: memref<8x32xbf16, #tpu.memory_space<vmem>>, %arg3: memref<1x8xf32, #tpu.memory_space<vmem>>, %arg4: memref<32x32xbf16, #tpu.memory_space<vmem>>, %arg5: memref<1x32xf32, #tpu.memory_space<vmem>>, %arg6: memref<32x32xbf16, #tpu.memory_space<vmem>>, %arg7: memref<1x32xf32, #tpu.memory_space<vmem>>, %arg8: memref<2x32xbf16, #tpu.memory_space<vmem>>, %arg9: memref<2x1xf32, #tpu.memory_space<vmem>>, %arg10: memref<64x32xbf16, #tpu.memory_space<vmem>>, %arg11: memref<1x32xf32, #tpu.memory_space<vmem>>, %arg12: memref<32x32xbf16, #tpu.memory_space<vmem>>, %arg13: memref<1x32xf32, #tpu.memory_space<vmem>>, %arg14: memref<32x32xbf16, #tpu.memory_space<vmem>>, %arg15: memref<1x32xf32, #tpu.memory_space<vmem>>, %arg16: memref<32x128xbf16, #tpu.memory_space<vmem>>, %arg17: memref<1x128xf32, #tpu.memory_space<vmem>>, %arg18: memref<8x128xf32, #tpu.memory_space<vmem>>) attributes {dimension_semantics = [#tpu.dimension_semantics<parallel>], iteration_bounds = array<i64: 2>, scalar_prefetch = 0 : i64, scratch_operands = 0 : i64, tpu.core_type = #tpu.core_type<tc>, window_params = [{transform_indices = @transform_0, window_bounds = array<i64: 8, 8, 32>}, {transform_indices = @transform_1, window_bounds = array<i64: 8, 32>}, {pipeline_mode = #tpu.pipeline_mode<synchronous>, transform_indices = @transform_2, window_bounds = array<i64: 1, 8>}, {pipeline_mode = #tpu.pipeline_mode<synchronous>, transform_indices = @transform_3, window_bounds = array<i64: 32, 32>}, {pipeline_mode = #tpu.pipeline_mode<synchronous>, transform_indices = @transform_4, window_bounds = array<i64: 1, 32>}, {pipeline_mode = #tpu.pipeline_mode<synchronous>, transform_indices = @transform_5, window_bounds = array<i64: 32, 32>}, {pipeline_mode = #tpu.pipeline_mode<synchronous>, transform_indices = @transform_6, window_bounds = array<i64: 1, 32>}, {pipeline_mode = #tpu.pipeline_mode<synchronous>, transform_indices = @transform_7, window_bounds = array<i64: 2, 32>}, {pipeline_mode = #tpu.pipeline_mode<synchronous>, transform_indices = @transform_8, window_bounds = array<i64: 2, 1>}, {pipeline_mode = #tpu.pipeline_mode<synchronous>, transform_indices = @transform_9, window_bounds = array<i64: 64, 32>}, {pipeline_mode = #tpu.pipeline_mode<synchronous>, transform_indices = @transform_10, window_bounds = array<i64: 1, 32>}, {pipeline_mode = #tpu.pipeline_mode<synchronous>, transform_indices = @transform_11, window_bounds = array<i64: 32, 32>}, {pipeline_mode = #tpu.pipeline_mode<synchronous>, transform_indices = @transform_12, window_bounds = array<i64: 1, 32>}, {pipeline_mode = #tpu.pipeline_mode<synchronous>, transform_indices = @transform_13, window_bounds = array<i64: 32, 32>}, {pipeline_mode = #tpu.pipeline_mode<synchronous>, transform_indices = @transform_14, window_bounds = array<i64: 1, 32>}, {pipeline_mode = #tpu.pipeline_mode<synchronous>, transform_indices = @transform_15, window_bounds = array<i64: 32, 128>}, {pipeline_mode = #tpu.pipeline_mode<synchronous>, transform_indices = @transform_16, window_bounds = array<i64: 1, 128>}, {transform_indices = @transform_17, window_bounds = array<i64: 8, 128>}]} {
    %c0 = arith.constant 0 : index
    %c0_0 = arith.constant 0 : index
    %c0_1 = arith.constant 0 : index
    %0 = vector.load %arg1[%c0, %c0_0, %c0_1] : memref<8x8x32xbf16, #tpu.memory_space<vmem>>, vector<8x8x32xbf16>
    %c0_2 = arith.constant 0 : index
    %c0_3 = arith.constant 0 : index
    %1 = vector.load %arg2[%c0_2, %c0_3] : memref<8x32xbf16, #tpu.memory_space<vmem>>, vector<8x32xbf16>
    %2 = vector.shape_cast %0 : vector<8x8x32xbf16> to vector<64x32xbf16>
    %c0_4 = arith.constant 0 : index
    %c0_5 = arith.constant 0 : index
    %3 = vector.load %arg4[%c0_4, %c0_5] : memref<32x32xbf16, #tpu.memory_space<vmem>>, vector<32x32xbf16>
    %cst = arith.constant dense<0.000000e+00> : vector<64x32xf32>
    %4 = tpu.matmul %2, %3, %cst {dimension_numbers = #tpu.dot_dimension_numbers<[1], [0], [0], [1], [0, 0, 1, 1], [], []>} : vector<64x32xbf16>, vector<32x32xbf16>, vector<64x32xf32> -> vector<64x32xf32>
    %c0_6 = arith.constant 0 : index
    %c0_7 = arith.constant 0 : index
    %5 = vector.load %arg5[%c0_6, %c0_7] : memref<1x32xf32, #tpu.memory_space<vmem>>, vector<1x32xf32>
    %6 = vector.broadcast %5 : vector<1x32xf32> to vector<64x32xf32>
    %7 = arith.addf %4, %6 : vector<64x32xf32>
    %cst_8 = arith.constant 0.000000e+00 : f32
    %8 = vector.broadcast %cst_8 : f32 to vector<64x32xf32>
    %9 = arith.maximumf %7, %8 : vector<64x32xf32>
    %c0_9 = arith.constant 0 : index
    %c0_10 = arith.constant 0 : index
    %10 = vector.load %arg6[%c0_9, %c0_10] : memref<32x32xbf16, #tpu.memory_space<vmem>>, vector<32x32xbf16>
    %cst_11 = arith.constant dense<0.000000e+00> : vector<8x32xf32>
    %11 = tpu.matmul %1, %10, %cst_11 {dimension_numbers = #tpu.dot_dimension_numbers<[1], [0], [0], [1], [0, 0, 1, 1], [], []>} : vector<8x32xbf16>, vector<32x32xbf16>, vector<8x32xf32> -> vector<8x32xf32>
    %c0_12 = arith.constant 0 : index
    %c0_13 = arith.constant 0 : index
    %12 = vector.load %arg7[%c0_12, %c0_13] : memref<1x32xf32, #tpu.memory_space<vmem>>, vector<1x32xf32>
    %13 = vector.broadcast %12 : vector<1x32xf32> to vector<8x32xf32>
    %14 = arith.addf %11, %13 : vector<8x32xf32>
    %cst_14 = arith.constant 0.000000e+00 : f32
    %15 = vector.broadcast %cst_14 : f32 to vector<8x32xf32>
    %16 = arith.maximumf %14, %15 : vector<8x32xf32>
    %17 = vector.shape_cast %9 : vector<64x32xf32> to vector<8x8x32xf32>
    %18 = vector.shape_cast %16 : vector<8x32xf32> to vector<8x1x32xf32>
    %19 = vector.broadcast %18 : vector<8x1x32xf32> to vector<8x8x32xf32>
    %20 = arith.mulf %17, %19 : vector<8x8x32xf32>
    %21 = arith.truncf %20 : vector<8x8x32xf32> to vector<8x8x32xbf16>
    %c0_15 = arith.constant 0 : index
    %c0_16 = arith.constant 0 : index
    %22 = vector.load %arg8[%c0_15, %c0_16] : memref<2x32xbf16, #tpu.memory_space<vmem>>, vector<2x32xbf16>
    %23 = vector.shape_cast %22 : vector<2x32xbf16> to vector<1x2x32xbf16>
    %24 = vector.broadcast %23 : vector<1x2x32xbf16> to vector<8x2x32xbf16>
    "tpu.trace_start"() <{level = 10 : i32, message = "bgm,bnm->bgn"}> : () -> ()
    %cst_17 = arith.constant dense<0.000000e+00> : vector<8x2x8xf32>
    %25 = tpu.matmul %24, %21, %cst_17 {dimension_numbers = #tpu.dot_dimension_numbers<[2], [2], [1], [1], [0, 0, 0, 1, 1, 1], [0], [0]>} : vector<8x2x32xbf16>, vector<8x8x32xbf16>, vector<8x2x8xf32> -> vector<8x2x8xf32>
    "tpu.trace_stop"() : () -> ()
    %c0_18 = arith.constant 0 : index
    %c0_19 = arith.constant 0 : index
    %26 = vector.load %arg9[%c0_18, %c0_19] : memref<2x1xf32, #tpu.memory_space<vmem>>, vector<2x1xf32>
    %27 = vector.shape_cast %26 : vector<2x1xf32> to vector<1x2x1xf32>
    %28 = vector.broadcast %27 : vector<1x2x1xf32> to vector<8x2x8xf32>
    %29 = arith.addf %25, %28 : vector<8x2x8xf32>
    %c0_20 = arith.constant 0 : index
    %c0_21 = arith.constant 0 : index
    %30 = vector.load %arg3[%c0_20, %c0_21] : memref<1x8xf32, #tpu.memory_space<vmem>>, vector<1x8xf32>
    %31 = vector.shape_cast %30 : vector<1x8xf32> to vector<1x1x8xf32>
    %32 = vector.broadcast %31 : vector<1x1x8xf32> to vector<8x2x8xf32>
    %33 = arith.addf %29, %32 : vector<8x2x8xf32>
    %cst_22 = arith.constant dense<0xFF800000> : vector<8x2xf32>
    %34 = vector.multi_reduction <maximumf>, %33, %cst_22 [2] : vector<8x2x8xf32> to vector<8x2xf32>
    %35 = vector.shape_cast %34 : vector<8x2xf32> to vector<8x2x1xf32>
    %36 = vector.broadcast %35 : vector<8x2x1xf32> to vector<8x2x8xf32>
    %37 = arith.subf %33, %36 : vector<8x2x8xf32>
    %38 = math.exp %37 : vector<8x2x8xf32>
    %cst_23 = arith.constant dense<0.000000e+00> : vector<8x2xf32>
    %39 = vector.multi_reduction <add>, %38, %cst_23 [2] : vector<8x2x8xf32> to vector<8x2xf32>
    %40 = vector.shape_cast %39 : vector<8x2xf32> to vector<8x2x1xf32>
    %41 = tpu.reciprocal %40 {approx = true} : vector<8x2x1xf32> -> vector<8x2x1xf32>
    %42 = vector.broadcast %41 : vector<8x2x1xf32> to vector<8x2x8xf32>
    %43 = arith.mulf %38, %42 : vector<8x2x8xf32>
    %44 = arith.truncf %43 : vector<8x2x8xf32> to vector<8x2x8xbf16>
    "tpu.trace_start"() <{level = 10 : i32, message = "bgn,bnd->bgd"}> : () -> ()
    %cst_24 = arith.constant dense<0.000000e+00> : vector<8x2x32xf32>
    %45 = tpu.matmul %44, %0, %cst_24 {dimension_numbers = #tpu.dot_dimension_numbers<[2], [1], [1], [2], [0, 0, 0, 1, 1, 2], [0], [0]>} : vector<8x2x8xbf16>, vector<8x8x32xbf16>, vector<8x2x32xf32> -> vector<8x2x32xf32>
    "tpu.trace_stop"() : () -> ()
    %46 = vector.shape_cast %45 : vector<8x2x32xf32> to vector<8x64xf32>
    %47 = arith.truncf %46 : vector<8x64xf32> to vector<8x64xbf16>
    %c0_25 = arith.constant 0 : index
    %c0_26 = arith.constant 0 : index
    %48 = vector.load %arg10[%c0_25, %c0_26] : memref<64x32xbf16, #tpu.memory_space<vmem>>, vector<64x32xbf16>
    %cst_27 = arith.constant dense<0.000000e+00> : vector<8x32xf32>
    %49 = tpu.matmul %47, %48, %cst_27 {dimension_numbers = #tpu.dot_dimension_numbers<[1], [0], [0], [1], [0, 0, 1, 1], [], []>} : vector<8x64xbf16>, vector<64x32xbf16>, vector<8x32xf32> -> vector<8x32xf32>
    %c0_28 = arith.constant 0 : index
    %c0_29 = arith.constant 0 : index
    %50 = vector.load %arg11[%c0_28, %c0_29] : memref<1x32xf32, #tpu.memory_space<vmem>>, vector<1x32xf32>
    %51 = vector.broadcast %50 : vector<1x32xf32> to vector<8x32xf32>
    %52 = arith.addf %49, %51 : vector<8x32xf32>
    %c0_30 = arith.constant 0 : index
    %c0_31 = arith.constant 0 : index
    %53 = vector.load %arg12[%c0_30, %c0_31] : memref<32x32xbf16, #tpu.memory_space<vmem>>, vector<32x32xbf16>
    %cst_32 = arith.constant dense<0.000000e+00> : vector<8x32xf32>
    %54 = tpu.matmul %1, %53, %cst_32 {dimension_numbers = #tpu.dot_dimension_numbers<[1], [0], [0], [1], [0, 0, 1, 1], [], []>} : vector<8x32xbf16>, vector<32x32xbf16>, vector<8x32xf32> -> vector<8x32xf32>
    %c0_33 = arith.constant 0 : index
    %c0_34 = arith.constant 0 : index
    %55 = vector.load %arg13[%c0_33, %c0_34] : memref<1x32xf32, #tpu.memory_space<vmem>>, vector<1x32xf32>
    %56 = vector.broadcast %55 : vector<1x32xf32> to vector<8x32xf32>
    %57 = arith.addf %54, %56 : vector<8x32xf32>
    %58 = arith.mulf %52, %57 : vector<8x32xf32>
    %59 = arith.truncf %58 : vector<8x32xf32> to vector<8x32xbf16>
    %c0_35 = arith.constant 0 : index
    %c0_36 = arith.constant 0 : index
    %60 = vector.load %arg14[%c0_35, %c0_36] : memref<32x32xbf16, #tpu.memory_space<vmem>>, vector<32x32xbf16>
    %cst_37 = arith.constant dense<0.000000e+00> : vector<8x32xf32>
    %61 = tpu.matmul %59, %60, %cst_37 {dimension_numbers = #tpu.dot_dimension_numbers<[1], [0], [0], [1], [0, 0, 1, 1], [], []>} : vector<8x32xbf16>, vector<32x32xbf16>, vector<8x32xf32> -> vector<8x32xf32>
    %c0_38 = arith.constant 0 : index
    %c0_39 = arith.constant 0 : index
    %62 = vector.load %arg15[%c0_38, %c0_39] : memref<1x32xf32, #tpu.memory_space<vmem>>, vector<1x32xf32>
    %63 = vector.broadcast %62 : vector<1x32xf32> to vector<8x32xf32>
    %64 = arith.addf %61, %63 : vector<8x32xf32>
    %cst_40 = arith.constant 0.000000e+00 : f32
    %65 = vector.broadcast %cst_40 : f32 to vector<8x32xf32>
    %66 = arith.maximumf %64, %65 : vector<8x32xf32>
    %67 = arith.truncf %66 : vector<8x32xf32> to vector<8x32xbf16>
    %c0_41 = arith.constant 0 : index
    %c0_42 = arith.constant 0 : index
    %68 = vector.load %arg16[%c0_41, %c0_42] : memref<32x128xbf16, #tpu.memory_space<vmem>>, vector<32x128xbf16>
    %cst_43 = arith.constant dense<0.000000e+00> : vector<8x128xf32>
    %69 = tpu.matmul %67, %68, %cst_43 {dimension_numbers = #tpu.dot_dimension_numbers<[1], [0], [0], [1], [0, 0, 1, 1], [], []>} : vector<8x32xbf16>, vector<32x128xbf16>, vector<8x128xf32> -> vector<8x128xf32>
    %c0_44 = arith.constant 0 : index
    %c0_45 = arith.constant 0 : index
    %70 = vector.load %arg17[%c0_44, %c0_45] : memref<1x128xf32, #tpu.memory_space<vmem>>, vector<1x128xf32>
    %71 = vector.broadcast %70 : vector<1x128xf32> to vector<8x128xf32>
    %72 = arith.addf %69, %71 : vector<8x128xf32>
    %c0_46 = arith.constant 0 : index
    %c0_47 = arith.constant 0 : index
    %73 = vector.load %arg18[%c0_46, %c0_47] : memref<8x128xf32, #tpu.memory_space<vmem>>, vector<8x128xf32>
    tpu.vector_store %arg18[%c0_46, %c0_47], %72 {strides = array<i32>} : memref<8x128xf32, #tpu.memory_space<vmem>>, vector<8x128xf32>,
    return
  }
  func.func @transform_0(%arg0: i32) -> (i32, i32, i32) {
    %c0_i32 = arith.constant 0 : i32
    %c0_i32_0 = arith.constant 0 : i32
    %c0_i32_1 = arith.constant 0 : i32
    return %arg0, %c0_i32, %c0_i32_0 : i32, i32, i32
  }
  func.func @transform_1(%arg0: i32) -> (i32, i32) {
    %c0_i32 = arith.constant 0 : i32
    %c0_i32_0 = arith.constant 0 : i32
    return %arg0, %c0_i32 : i32, i32
  }
  func.func @transform_2(%arg0: i32) -> (i32, i32) {
    %c0_i32 = arith.constant 0 : i32
    %c0_i32_0 = arith.constant 0 : i32
    %c0_i32_1 = arith.constant 0 : i32
    return %c0_i32, %c0_i32_0 : i32, i32
  }
  func.func @transform_3(%arg0: i32) -> (i32, i32) {
    %c0_i32 = arith.constant 0 : i32
    %c0_i32_0 = arith.constant 0 : i32
    %c0_i32_1 = arith.constant 0 : i32
    return %c0_i32, %c0_i32_0 : i32, i32
  }
  func.func @transform_4(%arg0: i32) -> (i32, i32) {
    %c0_i32 = arith.constant 0 : i32
    %c0_i32_0 = arith.constant 0 : i32
    %c0_i32_1 = arith.constant 0 : i32
    return %c0_i32, %c0_i32_0 : i32, i32
  }
  func.func @transform_5(%arg0: i32) -> (i32, i32) {
    %c0_i32 = arith.constant 0 : i32
    %c0_i32_0 = arith.constant 0 : i32
    %c0_i32_1 = arith.constant 0 : i32
    return %c0_i32, %c0_i32_0 : i32, i32
  }
  func.func @transform_6(%arg0: i32) -> (i32, i32) {
    %c0_i32 = arith.constant 0 : i32
    %c0_i32_0 = arith.constant 0 : i32
    %c0_i32_1 = arith.constant 0 : i32
    return %c0_i32, %c0_i32_0 : i32, i32
  }
  func.func @transform_7(%arg0: i32) -> (i32, i32) {
    %c0_i32 = arith.constant 0 : i32
    %c0_i32_0 = arith.constant 0 : i32
    %c0_i32_1 = arith.constant 0 : i32
    return %c0_i32, %c0_i32_0 : i32, i32
  }
  func.func @transform_8(%arg0: i32) -> (i32, i32) {
    %c0_i32 = arith.constant 0 : i32
    %c0_i32_0 = arith.constant 0 : i32
    %c0_i32_1 = arith.constant 0 : i32
    return %c0_i32, %c0_i32_0 : i32, i32
  }
  func.func @transform_9(%arg0: i32) -> (i32, i32) {
    %c0_i32 = arith.constant 0 : i32
    %c0_i32_0 = arith.constant 0 : i32
    %c0_i32_1 = arith.constant 0 : i32
    return %c0_i32, %c0_i32_0 : i32, i32
  }
  func.func @transform_10(%arg0: i32) -> (i32, i32) {
    %c0_i32 = arith.constant 0 : i32
    %c0_i32_0 = arith.constant 0 : i32
    %c0_i32_1 = arith.constant 0 : i32
    return %c0_i32, %c0_i32_0 : i32, i32
  }
  func.func @transform_11(%arg0: i32) -> (i32, i32) {
    %c0_i32 = arith.constant 0 : i32
    %c0_i32_0 = arith.constant 0 : i32
    %c0_i32_1 = arith.constant 0 : i32
    return %c0_i32, %c0_i32_0 : i32, i32
  }
  func.func @transform_12(%arg0: i32) -> (i32, i32) {
    %c0_i32 = arith.constant 0 : i32
    %c0_i32_0 = arith.constant 0 : i32
    %c0_i32_1 = arith.constant 0 : i32
    return %c0_i32, %c0_i32_0 : i32, i32
  }
  func.func @transform_13(%arg0: i32) -> (i32, i32) {
    %c0_i32 = arith.constant 0 : i32
    %c0_i32_0 = arith.constant 0 : i32
    %c0_i32_1 = arith.constant 0 : i32
    return %c0_i32, %c0_i32_0 : i32, i32
  }
  func.func @transform_14(%arg0: i32) -> (i32, i32) {
    %c0_i32 = arith.constant 0 : i32
    %c0_i32_0 = arith.constant 0 : i32
    %c0_i32_1 = arith.constant 0 : i32
    return %c0_i32, %c0_i32_0 : i32, i32
  }
  func.func @transform_15(%arg0: i32) -> (i32, i32) {
    %c0_i32 = arith.constant 0 : i32
    %c0_i32_0 = arith.constant 0 : i32
    %c0_i32_1 = arith.constant 0 : i32
    return %c0_i32, %c0_i32_0 : i32, i32
  }
  func.func @transform_16(%arg0: i32) -> (i32, i32) {
    %c0_i32 = arith.constant 0 : i32
    %c0_i32_0 = arith.constant 0 : i32
    %c0_i32_1 = arith.constant 0 : i32
    return %c0_i32, %c0_i32_0 : i32, i32
  }
  func.func @transform_17(%arg0: i32) -> (i32, i32) {
    %c0_i32 = arith.constant 0 : i32
    %c0_i32_0 = arith.constant 0 : i32
    return %arg0, %c0_i32 : i32, i32
  }
}

</mosaic_0001>

<bundles_post_ra>
// kernel: tpu_custom_call.1
= control target key start
LH: loop header
LB: loop body
LE: loop exit
PB: predicated region body
PF: predicated region fallthrough
CT: control target
= control target key end

     0   :  { %s3527_s0 = inlined_call_operand.hbm [shape: bf16[16,8,32], index: 0, kind: input, shape index: {}]   ;;  %s3528_s1 = inlined_call_operand.hbm [shape: bf16[16,32], index: 1, kind: input, shape index: {}]   ;;  %s3529_s2 = inlined_call_operand.vmem [shape: f32[1,8], index: 2, kind: input, shape index: {}]   ;;  %s3530_s3 = inlined_call_operand.vmem [shape: bf16[32,32], index: 3, kind: input, shape index: {}]   ;;  %s3531_s4 = inlined_call_operand.vmem [shape: f32[1,32], index: 4, kind: input, shape index: {}]   ;;  %s3532_s5 = inlined_call_operand.vmem [shape: bf16[32,32], index: 5, kind: input, shape index: {}]   ;;  %s3533_s6 = inlined_call_operand.vmem [shape: f32[1,32], index: 6, kind: input, shape index: {}]   ;;  %s3534_s7 = inlined_call_operand.hbm [shape: bf16[2,32], index: 7, kind: input, shape index: {}]   ;;  %s3535_s8 = inlined_call_operand.vmem [shape: f32[2,1], index: 8, kind: input, shape index: {}]   ;;  %s3536_s9 = inlined_call_operand.vmem [shape: bf16[64,32], index: 9, kind: input, shape index: {}]   ;;  %s3537_s10 = inlined_call_operand.vmem [shape: f32[1,32], index: 10, kind: input, shape index: {}]   ;;  %s3538_s11 = inlined_call_operand.vmem [shape: bf16[32,32], index: 11, kind: input, shape index: {}]   ;;  %s3539_s12 = inlined_call_operand.vmem [shape: f32[1,32], index: 12, kind: input, shape index: {}]   ;;  %s3540_s13 = inlined_call_operand.hbm [shape: bf16[32,32], index: 13, kind: input, shape index: {}]   ;;  %s3541_s14 = inlined_call_operand.vmem [shape: f32[1,32], index: 14, kind: input, shape index: {}]   ;;  %s3542_s15 = inlined_call_operand.hbm [shape: bf16[32,128], index: 15, kind: input, shape index: {}]   ;;  %s3543_s16 = inlined_call_operand.vmem [shape: f32[1,128], index: 16, kind: input, shape index: {}]   ;;  %s3544_s17 = inlined_call_operand.hbm [shape: f32[16,128], index: 17, kind: output, shape index: {}]  }
   0x1   :  { %3562 = sst [smem:[#allocation23_spill]] %s3527_s0 }
   0x2   :  { %3563 = sst [smem:[#allocation24_spill]] %s3528_s1 }
   0x3   :  { %3564 = sst [smem:[#allocation25_spill]] %s3534_s7 }
   0x4   :  { %3565 = sst [smem:[#allocation26_spill]] %s3537_s10 }
   0x5   :  { %3566 = sst [smem:[#allocation27_spill]] %s3539_s12 }
   0x6   :  { %3567 = sst [smem:[#allocation28_spill]] %s3540_s13 }
   0x7   :  { %3568 = sst [smem:[#allocation29_spill]] %s3541_s14 }
   0x8   :  { %3569 = sst [smem:[#allocation30_spill]] %s3542_s15 }
   0x9   :  { %3570 = sst [smem:[#allocation31_spill]] %s3543_s16 }
   0xa   :  { %3571 = sst [smem:[#allocation32_spill]] %s3544_s17 }
   0xb   :  { %22 = vsyncpa [#allocation3], 0 }
   0xc   :  { %24 = vsyncpa [#allocation3 + $0x1], 0 }
   0xd   :  { %25 = vsyncpa [#allocation6], 0 }
   0xe   :  { %27 = vsyncpa [#allocation6 + $0x1], 0 }
   0xf   :  { %28 = vsyncpa [#allocation9], 0 }
  0x10   :  { %29 = vsyncpa [#allocation4], 0 }
  0x11   :  { %31 = vsyncpa [#allocation4 + $0x1], 0  ;;  %s3007_s24 = smov 0   ;;  %s3009_s25 = smov 0  }
  0x12   :  { %s3011_s26 = smov 0   ;;  %s3013_s27 = smov 0  }
  0x13 LB: > { %3572 = sst [smem:[#allocation17_spill]] %s2888_s24  ;;  %s3028_s28 = sadd.s32 4294967295, %s2900_s27   ;;  %s2900_s27 = sphi %s3013_s27, %s3611_s27   ;;  %s2896_s26 = sphi %s3011_s26, %s3616_s26   ;;  %s2892_s25 = sphi %s3009_s25, %s3615_s25   ;;  %s2888_s24 = sphi %s3007_s24, %s3614_s24  }
  0x14   : > { %3573 = sst [smem:[#allocation18_spill]] %s2896_s26  ;;  %s2268_s29 = sadd.s32 4294967294, %s2900_s27  }
  0x15   : > { %p57_p0 = scmp.ne.s32.totalorder %s2892_s25, %s2888_s24  ;;  %p3549_p1 = scmp.eq.s32.totalorder %s3028_s28, 0 }
  0x16   : > { %p422_p2 = scmp.eq.s32.totalorder %s3028_s28, 1  ;;  %p428_p3 = scmp.eq.s32.totalorder %s2268_s29, 1 }
  0x17   : > { %p3037_p4 = por %p3549_p1, %p57_p0  ;;  %p2269_p5 = scmp.ge.s32.totalorder %s2900_s27, 1 }
  0x18   : > { %p3042_p6 = por %p428_p3, %p57_p0  ;;  %p435_p7 = scmp.lt.s32.totalorder %s2900_s27, 3 }
  0x19   : > { %s3574_s0 = scalar_select %p3037_p4, 1, 0 }
  0x1a   : > { %s3575_s30 = scalar_select %p3042_p6, 1, 0 }
  0x1b   : > { %p3047_p8 = pnand %p2269_p5, %p435_p7  ;;  %s2902_s19 = smov [#allocation7]  }
  0x1c   : > { %3576 = sst [smem:[#allocation19_spill]] %s3575_s30  ;;  %s463_s1 = sshll.u32 %s2902_s19, 4  ;;  %s464_s1 = int_to_ptr.vmem [resolvable:$true] %s463_s1 }
  0x1d   : > { %s3577_s18 = scalar_select %p3047_p8, 1, 0 }
  0x1e   : > { %p2566_p10 = pneg %p3047_p8  ;;  %s2903_s20 = smov [#allocation8]  }
  0x1f   : > { %s488_s21 = sshll.u32 %s2903_s20, 4  ;;  %s2904_s23 = smov [#allocation10]   ;;  %s3060_s21 = int_to_ptr.vmem [resolvable:$true] %s488_s21 }
  0x20   : > { %p3056_p11 = pnand %p2566_p10, %p3549_p1  ;;  %s504_s29 = sshll.u32 %s2904_s23, 4  ;;  %s505_s29 = int_to_ptr.vmem [resolvable:$true] %s504_s29 }
  0x21   : > { %s2701_s19 = scalar_lea.vmem %s464_s1, 16  ;;  %s2708_s20 = scalar_lea.vmem %s464_s1, 32 }
  0x22   : > { %p2692_p12 = pneg %p3056_p11  ;;  %p2702_p13 = scmp.ne.s32.totalorder %s464_s1, %s2701_s19 }
  0x23   : > { %p2709_p5 = scmp.lt.s32.totalorder %s464_s1, %s464_s1  ;;  %p2710_p7 = scmp.lt.s32.totalorder %s2708_s20, %s2701_s19 }
  0x24   : > { %p2704_p0 = pnand %p2702_p13, %p2692_p12 }
  0x25   : > { %p2711_p10 = por %p2710_p7, %p2709_p5 }
  0x26   : > { %p2705_p3 = pneg %p2704_p0 }
  0x28   : > { %p2712_p9 = pnand %p2711_p10, %p2705_p3 }
  0x2a   : > { %2715 = shalt.err (!%p2712_p9)
}
  0x2b   : > { %s3579_s7 = sld [smem:[#allocation25_spill]]  ;;  %s2727_s23 = scalar_lea.vmem %s3060_s21, 256 }
  0x2c   : > { %p2728_p1 = scmp.ne.s32.totalorder %s3060_s21, %s2727_s23  ;;  %p2735_p5 = scmp.lt.s32.totalorder %s3060_s21, %s3060_s21 }
  0x2d   : > { %p2736_p3 = scmp.lt.s32.totalorder %s2727_s23, %s2727_s23 }
  0x2e   : > { %p2730_p13 = pnand %p2728_p1, %p2692_p12 }
  0x2f   : > { %p2737_p9 = por %p2736_p3, %p2735_p5 }
  0x30   : > { %p2731_p0 = pneg %p2730_p13 }
  0x31   : > { %2569 = dma.hbm_to_vmem [thread:$0]  (!%p3056_p11), %s3579_s7, 16, %s464_s1, [#allocation6]  }
  0x32   : > { %p2738_p7 = pnand %p2737_p9, %p2731_p0 }
  0x34   : > { %2741 = shalt.err (!%p2738_p7)
}
  0x35   : > { %s3550_s19 = smov 64   ;;  %s3551_s24 = smov 4  }
  0x36   : > { %s3580_s13 = sld [smem:[#allocation28_spill]]  ;;  %s2753_s20 = scalar_lea.vmem %s505_s29, 256 }
  0x37   : > { %p2754_p1 = scmp.ne.s32.totalorder %s505_s29, %s2753_s20  ;;  %p2761_p0 = scmp.lt.s32.totalorder %s505_s29, %s505_s29 }
  0x38   : > { %p2762_p5 = scmp.lt.s32.totalorder %s2753_s20, %s2753_s20 }
  0x39   : > { %p2756_p10 = pnand %p2754_p1, %p2692_p12 }
  0x3a   : > { %p2763_p3 = por %p2762_p5, %p2761_p0 }
  0x3b   : > { %p2757_p13 = pneg %p2756_p10 }
  0x3c   : > { %2572 = dma.hbm_to_vmem [thread:$0]  (!%p3056_p11), %s3580_s13, 256, %s3060_s21, [#allocation9], %s3550_s19, %s3550_s19, %s3551_s24  }
  0x3d   : > { %p2764_p9 = pnand %p2763_p3, %p2757_p13 }
  0x3f   : > { %2767 = shalt.err (!%p2764_p9)
}
  0x40   : > { %s3581_s15 = sld [smem:[#allocation30_spill]]  ;;  %s3100_s21 = sadd.s32 1, %s2900_s27  }
  0x41   : > { %3582 = sst [smem:[#allocation20_spill]] %s3100_s21  ;;  %s41_s22 = ssub.s32 %s2900_s27, %s3100_s21 }
  0x42   : > { %s44_s1 = sadd.s32 1, %s2896_s26  ;;  %p42_p12 = scmp.eq.s32.totalorder %s41_s22, 0 }
  0x43   : > { %p51_p7 = scmp.ne.s32.totalorder %s2896_s26, %s2892_s25  ;;  %p52_p1 = scmp.eq.s32.totalorder %s2900_s27, 0 }
  0x44   : > { %p2590_p10 = scmp.lt.s32.totalorder %s2900_s27, 2  ;;  %s3119_s30 = sand.u32 1, %s2896_s26  }
  0x45   : > { %s3110_s20 = scalar_select %p42_p12, %s2896_s26, %s44_s1  }
  0x46   : > { %2575 = dma.hbm_to_vmem [thread:$0]  (!%p3056_p11), %s3581_s15, 256, %s505_s29, [#allocation9], %s3550_s19, %s3550_s19, %s3551_s24  }
  0x47   : > { %3583 = sst [smem:[#allocation21_spill]] %s3110_s20  ;;  %p53_p13 = por %p52_p1, %p51_p7 }
  0x48   : > { %p3114_p0 = por %p422_p2, %p51_p7  ;;  %s2340_s29 = sshll.u32 %s2900_s27, 9 }
  0x49   : > { %s2274_s19 = sshll.u32 %s3119_s30, 5  ;;  %s3586_s22 = sld [smem:[#allocation23_spill]] }
  0x4a   : > { %s3584_s23 = scalar_select %p3114_p0, 1, 0 }
  0x4b   : > { %s525_s1 = scalar_lea.vmem [#allocation2], %s2274_s19  ;;  %p3128_p2 = pnand %p2590_p10, %p53_p13 }
  0x4c   : > { %3585 = sst [smem:[#allocation22_spill]] %s3584_s23  ;;  %s532_s15 = sshll.u32 %s525_s1, 4  ;;  %s3132_s15 = int_to_ptr.vmem [resolvable:$true] %s532_s15 }
  0x4d   : > { %p2770_p5 = pneg %p3128_p2 }
  0x4f   : > { %s3126_s13 = scalar_lea.hbm %s3586_s22, %s2340_s29  ;;  %s2773_s24 = scalar_lea.hbm %s3586_s22, 1024 }
  0x50   : > { %s2768_s17 = scalar_lea.hbm %s3126_s13, 512  ;;  %p2774_p12 = scmp.lt.s32.totalorder %s3126_s13, %s3586_s22 }
  0x51   : > { %p2769_p11 = scmp.ne.s32.totalorder %s3126_s13, %s2768_s17  ;;  %p2775_p7 = scmp.lt.s32.totalorder %s2773_s24, %s2768_s17 }
  0x53   : > { %p2771_p3 = pnand %p2770_p5, %p2769_p11  ;;  %p2776_p1 = por %p2775_p7, %p2774_p12 }
  0x55   : > { %p2772_p9 = pneg %p2771_p3 }
  0x57   : > { %p2777_p10 = pnand %p2776_p1, %p2772_p9 }
  0x59   : > { %2780 = shalt.err (!%p2777_p10)
}
  0x5a   : > { %s2781_s26 = scalar_lea.vmem %s3132_s15, 512  ;;  %s2907_s7 = smov [#allocation2]  }
  0x5b   : > { %p2782_p13 = scmp.ne.s32.totalorder %s3132_s15, %s2781_s26  ;;  %s2786_s19 = sshll.u32 %s2907_s7, 4  ;;  %s2787_s19 = int_to_ptr.vmem [resolvable:$false] %s2786_s19 }
  0x5c   : > { %s2788_s21 = scalar_lea.vmem %s2787_s19, 1024  ;;  %p2789_p6 = scmp.lt.s32.totalorder %s3132_s15, %s2787_s19 }
  0x5d   : > { %p2784_p11 = pnand %p2782_p13, %p2770_p5  ;;  %p2790_p0 = scmp.lt.s32.totalorder %s2788_s21, %s2781_s26 }
  0x5f   : > { %p2785_p3 = pneg %p2784_p11  ;;  %p2791_p4 = por %p2790_p0, %p2789_p6 }
  0x61   : > { %p2792_p12 = pnand %p2791_p4, %p2785_p3 }
  0x63   : > { %2795 = shalt.err (!%p2792_p12)
}
  0x64   : > { %s3588_s17 = smov 4   ;;  %s3589_s24 = smov 64  }
  0x65   : > { %s3590_s29 = scalar_lea.sflag [#allocation3], %s3119_s30  ;;  %s2277_s1 = sshll.u32 %s3119_s30, 2 }
  0x66   : > { %2579 = dma.hbm_to_vmem [thread:$0]  (!%p3128_p2), %s3126_s13, 512, %s3132_s15, %s3590_s29, %s3589_s24, %s3589_s24, %s3588_s17  }
  0x67   : > { %s2278_s7 = sshll.u32 %s2900_s27, 6  ;;  %s3591_s19 = sld [smem:[#allocation24_spill]] }
  0x68   : > { %s546_s16 = scalar_lea.vmem [#allocation5], %s2277_s1  ;;  %s3592_s14 = sand.u32 1, %s2900_s27  }
  0x69   : > { %s553_s23 = sshll.u32 %s546_s16, 4  ;;  %s543_s10 = scalar_lea.sflag [#allocation6], %s3592_s14  ;;  %s554_s23 = int_to_ptr.vmem [resolvable:$true] %s553_s23 }
  0x6d   : > { %s3170_s22 = scalar_lea.hbm %s3591_s19, %s2278_s7  ;;  %s2801_s30 = scalar_lea.hbm %s3591_s19, 128 }
  0x6e   : > { %s2796_s12 = scalar_lea.hbm %s3170_s22, 64  ;;  %p2802_p9 = scmp.lt.s32.totalorder %s3170_s22, %s3591_s19 }
  0x6f   : > { %p2797_p4 = scmp.ne.s32.totalorder %s3170_s22, %s2796_s12  ;;  %p2803_p7 = scmp.lt.s32.totalorder %s2801_s30, %s2796_s12 }
  0x71   : > { %p2799_p6 = pnand %p2797_p4, %p2770_p5  ;;  %p2804_p1 = por %p2803_p7, %p2802_p9 }
  0x73   : > { %p2800_p0 = pneg %p2799_p6 }
  0x75   : > { %p2805_p10 = pnand %p2804_p1, %p2800_p0 }
  0x77   : > { %2808 = shalt.err (!%p2805_p10)
}
  0x78   : > { %s2809_s16 = scalar_lea.vmem %s554_s23, 64  ;;  %s2908_s14 = smov [#allocation5]  }
  0x79   : > { %p2810_p13 = scmp.ne.s32.totalorder %s554_s23, %s2809_s16  ;;  %s2814_s29 = sshll.u32 %s2908_s14, 4  ;;  %s2815_s29 = int_to_ptr.vmem [resolvable:$false] %s2814_s29 }
  0x7a   : > { %s2816_s1 = scalar_lea.vmem %s2815_s29, 128  ;;  %p2817_p12 = scmp.lt.s32.totalorder %s554_s23, %s2815_s29 }
  0x7b   : > { %p2812_p11 = pnand %p2810_p13, %p2770_p5  ;;  %p2818_p4 = scmp.lt.s32.totalorder %s2816_s1, %s2809_s16 }
  0x7d   : > { %p2813_p3 = pneg %p2812_p11  ;;  %p2819_p6 = por %p2818_p4, %p2817_p12 }
  0x7f   : > { %p2820_p8 = pnand %p2819_p6, %p2813_p3 }
  0x81   : > { %2823 = shalt.err (!%p2820_p8)
}
  0x82   : > { %2582 = dma.hbm_to_vmem [thread:$0]  (!%p3128_p2), %s3170_s22, 64, %s554_s23, %s543_s10  }
  0x83   : > { %p3593_p0 = scmp.ne.s32.totalorder %s3577_s18, 0 }
  0x84   : > { %s3195_s12 = sand.u32 (!%p3593_p0), 1, %s2892_s25   ;;  %p3594_p5 = scmp.ne.s32.totalorder (!%p3593_p0), %s3574_s0, 0 }
  0x85   : > { %562 = sbr.rel (%p3593_p0) target bundleno = 1840 (0x730), region = 88  ;;  %s2280_s7 = sshll.u32 (!%p3593_p0), %s3195_s12, 5 }
  0x86   : > { %s565_s26 = scalar_lea.sflag (!%p3593_p0), [#allocation3], %s3195_s12  ;;  %s3199_s21 = scalar_lea.vmem (!%p3593_p0), [#allocation2], %s2280_s7 }
  0x8a   : > { %2867 = dma.done.wait (%p3594_p5), %s565_s26, 512  }
  0x8b   : > { %2869 = vsyncadd (%p3594_p5), %s565_s26, 4294966784  ;;  %s573_s10 = sand.u32 1, %s3028_s28   ;;  %s2281_s18 = sshll.u32 %s3195_s12, 2 }
  0x8c   : > { %s574_s20 = scalar_lea.sflag [#allocation6], %s573_s10  ;;  %s3207_s23 = scalar_lea.vmem [#allocation5], %s2281_s18 }
  0x8d   : > { %2871 = dma.done.wait (%p3594_p5), %s574_s20, 64  }
  0x8e   : > { %2873 = vsyncadd (%p3594_p5), %s574_s20, 4294967232  ;;  %p3595_p8 = scmp.eq.s32.totalorder %s3028_s28, 0 }
  0x90   : > { %2875 = dma.done.wait (%p3595_p8), [#allocation6], 16   ;;  %p3596_p2 = pmov %p3595_p8 }
  0x92   : > { %2877 = vsyncadd (%p3596_p2), [#allocation6], 4294967280  ;;  %p3597_p9 = pmov %p3596_p2 }
  0x93   : > { %p3598_p7 = pmov %p3596_p2 }
  0x94   : > { %2879 = dma.done.wait (%p3597_p9), [#allocation9], 512  }
  0x95   : > { %2881 = vsyncadd (%p3598_p7), [#allocation9], 4294966784  ;;  %v2909_v0 = vmov 0.0   ;;  %vm2910_vm0 = vmmov 0   ;;  %v2640_v1 = vld [vmem:[%s3530_s3 + $0x8] sm:$0xff]   ;;  %v2642_v3 = vld [vmem:[%s3530_s3] sm:$0xff]   ;;  %v857_v22 = vlaneseq }
  0x96   : > { %2408 = vmatprep.subr.bf16.mxu1 %v2909_v0  ;;  %2412 = vmatprep.mubr.msk.bf16.mxu1 %vm2910_vm0, %v2909_v0  ;;  %v2641_v2 = vld [vmem:[%s3532_s5 + $0x8] sm:$0xff]   ;;  %v2643_v4 = vld [vmem:[%s3532_s5] sm:$0xff]   ;;  %vm699_vm1 = vcmask 261120   ;;  %v3252_v10 = vld [vmem:[%s3199_s21 + $0x10] sm:$0xf]  ;;  %v2911_v19 = vmov 0  }
  0x97   : > { %2396 = vmatprep.subr.bf16.mxu0 %v2640_v1  ;;  %2409 = vmatpush3.bf16.msra.mxu1 %v2641_v2  ;;  %v3238_v5 = vld [vmem:[%s3199_s21] sm:$0xf]  ;;  %v3241_v6 = vld [vmem:[%s3199_s21 + $0x4] sm:$0xf]  ;;  %v3246_v8 = vld [vmem:[%s3199_s21 + $0x8] sm:$0xf] }
  0x98   : > { %2397 = vmatpush3.bf16.msra.mxu0 %v2640_v1  ;;  %2410 = vmatprep.subr.bf16.mxu1 %v2909_v0  ;;  %v2287_v7 = vcombine.low %v3238_v5, %v3241_v6  ;;  %v3249_v9 = vld [vmem:[%s3199_s21 + $0xc] sm:$0xf]  ;;  %v3257_v12 = vld [vmem:[%s3199_s21 + $0x14] sm:$0xf]  ;;  %v3260_v13 = vld [vmem:[%s3207_s23] sm:$0xf] }
  0x99   : > { %2398 = vmatprep.subr.bf16.mxu0 %v2642_v3  ;;  %v2288_v11 = vcombine.low %v3246_v8, %v3249_v9  ;;  %v2289_v14 = vcombine.low %v3252_v10, %v3257_v12  ;;  %v3267_v15 = vld [vmem:[%s3199_s21 + $0x18] sm:$0xf]  ;;  %v3270_v16 = vld [vmem:[%s3199_s21 + $0x1c] sm:$0xf]  ;;  %v959_v18 = vld [vmem:[%s3535_s8] sm:$0x3]  ;;  %2639 = vset.pattern.permute.xlu0 %v2911_v19 }
  0x9a   : > { %2400 = vmatprep.mubr.msk.bf16.mxu0 %vm699_vm1, %v2287_v7  ;;  %v2290_v17 = vcombine.low %v3267_v15, %v3270_v16  ;;  %962 = vperm.xlu0 %2639, %v959_v18   ;;  %v2912_v20 = vmov 1966171168   ;;  %v3287_v24 = vshrl.u32 %v857_v22, 7  ;;  %v2297_v25 = vld [vmem:[%s3533_s6] ss:$0 sm:$0xff]  ;;  %vm1327_vm2 = vcmask 58368  }
  0x9b   : > { %2411 = vmatpush3.bf16.msra.mxu1 %v2643_v4  ;;  %v855_v21 = vunpack.c.l.s4 %v2912_v20  ;;  %v2286_v33 = vld [vmem:[%s3531_s4] ss:$0 sm:$0xff]  ;;  %vm1428_vm3 = vcmask 1043456   ;;  %vm1424_vm4 = vcmask 64512   ;;  %s2915_s1 = smov 32   ;;  %vm1889_vm5 = vcmask 523264  }
  0x9c   : > { %2399 = vmatpush3.bf16.msra.mxu0 %v2642_v3  ;;  %2416 = vmatprep.subr.bf16.mxu1 %v2909_v0  ;;  %v3297_v37 = vsub.s32 0, %v3287_v24  ;;  %s3599_s21 = sld [smem:[#allocation27_spill]]  ;;  %s2285_s15 = sshll.u32 %s3195_s12, 3 }
  0x9d   : > { %2422 = vmatprep.subr.bf16.mxu0 %v2909_v0  ;;  %v856_v23 = vunpack.c.0.s8 %v855_v21  ;;  %s3600_s20 = sld [smem:[#allocation26_spill]]  ;;  %s2337_s16 = sshll.u32 %s3028_s28, 7 }
  0x9e   : > { %2413 = vmatmul.mubr.msk.bf16.vlgmr.msra.gmra.mxu1 %vm699_vm1, %v3260_v13  ;;  %s3601_s22 = sld [smem:[#allocation29_spill]]  ;;  %s644_s14 = scalar_lea.vmem [#allocation11], %s2285_s15 }
  0x9f   : > { %2401 = vmatmul.mubr.msk.bf16.vlgmr.msra.gmra.mxu0 %vm699_vm1, %v2288_v11  ;;  %2418 = vmatprep.mubr.msk.bf16.mxu1 %vm2910_vm0, %v2909_v0  ;;  %v859_v29 = vsub.s32 %v856_v23, %v3287_v24  ;;  %s3602_s13 = sld [smem:[#allocation22_spill]]  ;;  %s2147_s29 = sshll.u32 %s644_s14, 4  ;;  %s3486_s29 = int_to_ptr.vmem [resolvable:$true] %s2147_s29 }
  0xa0   : > { %2404 = vmatprep.mubr.msk.bf16.mxu0 %vm699_vm1, %v2289_v14  ;;  %s3603_s24 = sld [smem:[#allocation31_spill]]  ;;  %s2134_s18 = scalar_lea.sflag [#allocation4], %s3195_s12 }
  0xa1   : > { %s3604_s26 = sld [smem:[#allocation32_spill]]  ;;  %s2916_s28 = smov [#allocation11]  }
  0xa2   : > { %s2828_s23 = sshll.u32 %s2916_s28, 4  ;;  %s2829_s23 = int_to_ptr.vmem [resolvable:$false] %s2828_s23 }
  0xa3   : > { %s2830_s0 = scalar_lea.vmem %s2829_s23, 256  ;;  %p2831_p3 = scmp.lt.s32.totalorder %s3486_s29, %s2829_s23 }
  0xa5   : > { %p3606_p10 = scmp.ne.s32.totalorder %s3602_s13, 0 }
  0xa7   : > { %2405 = vmatmul.mubr.msk.bf16.gmra.mxu0 %vm699_vm1, %v2290_v17  ;;  %s3484_s10 = scalar_lea.hbm %s3604_s26, %s2337_s16 }
  0xa8   : > { %2424 = vmatprep.mubr.msk.bf16.mxu0 %vm2910_vm0, %v2909_v0 }
 0x15e   : > { %v845_v26 = vpop.f32.mrf.mxu1 }
 0x15f   : > { %v2402_v27 = vpop.f32.mrf.mxu0  ;;  %v846_v28 = vadd.f32 %v2297_v25, %v845_v26 }
 0x160   : > { %v2414_v30 = vpop.f32.mrf.mxu1  ;;  %v755_v52 = vadd.f32 %v2402_v27, %v2286_v33  ;;  %v958_v27 = vld [vmem:[#allocation7] sm:$0x1] }
 0x161   : > { %v746_v31 = vpop.f32.mrf.mxu0  ;;  %v851_v32 = vmax.f32 %v846_v28, 0.0 }
 0x162   : > { %v848_v34 = vpop.f32.mrf.mxu1  ;;  %v747_v38 = vadd.f32 %v2286_v33, %v746_v31  ;;  %v779_v63 = vmax.f32 %v755_v52, 0.0  ;;  %v963_v52 = vpop.permute.xlu0 %962 }
 0x163   : > { %v2403_v35 = vpop.f32.mrf.mxu0  ;;  %v860_v36 = vrot.slane %v851_v32, %v859_v29  ;;  %v853_v43 = vcombine.high %v851_v32, %v851_v32 }
 0x164   : > { %v2415_v39 = vpop.f32.mrf.mxu1  ;;  %v777_v48 = vmax.f32 %v747_v38, 0.0  ;;  %v758_v57 = vadd.f32 %v2403_v35, %v2286_v33 }
 0x165   : > { %v749_v40 = vpop.f32.mrf.mxu0  ;;  %v868_v41 = vcombine.high %v860_v36, %v860_v36  ;;  %v876_v42 = vrot.slane %v860_v36, %v859_v29  ;;  %v867_v55 = vrot.slane %v853_v43, %v859_v29 }
 0x166   : > { %v750_v44 = vadd.f32 %v2286_v33, %v749_v40  ;;  %v780_v4 = vmax.f32 %v758_v57, 0.0 }
 0x167   : > { %v2406_v45 = vpop.f32.mrf.mxu0  ;;  %v890_v46 = vrot.slane %v868_v41, %v859_v29  ;;  %v898_v47 = vcombine.high %v876_v42, %v876_v42  ;;  %v905_v49 = vrot.slane %v876_v42, %v3297_v37  ;;  %v869_v3 = vcombine.high %v867_v55, %v867_v55 }
 0x168   : > { %v778_v50 = vmax.f32 %v750_v44, 0.0  ;;  %v883_v20 = vrot.slane %v867_v55, %v859_v29  ;;  %v771_v31 = vadd.f32 %v2406_v45, %v2286_v33 }
 0x169   : > { %v762_v51 = vpop.f32.mrf.mxu0  ;;  %v900_v53 = vcombine.high %v890_v46, %v890_v46  ;;  %v909_v54 = vrot.slane %v890_v46, %v3297_v37  ;;  %v942_v56 = vmul.f32 %v905_v49, %v777_v48  ;;  %v913_v59 = vrot.slane %v898_v47, %v3297_v37 }
 0x16a   : > { %v763_v11 = vadd.f32 %v2286_v33, %v762_v51  ;;  %v897_v21 = vrot.slane %v869_v3, %v859_v29  ;;  %v921_v28 = vrot.slane %v883_v20, %v3297_v37  ;;  %v899_v32 = vcombine.high %v883_v20, %v883_v20 }
 0x16b   : > { %v2407_v58 = vpop.f32.mrf.mxu0  ;;  %v943_v60 = vmul.f32 %v909_v54, %v778_v50  ;;  %v950_v61 = vpack.c.bf16 %v942_v56, %v942_v56  ;;  %v917_v62 = vrot.slane %v900_v53, %v3297_v37  ;;  %v944_v7 = vmul.f32 %v913_v59, %v779_v63  ;;  %v2309_v54 = vld [vmem:[%s3529_s2] ss:$0 sm:$0xff] }
 0x16c   : > { %v781_v23 = vmax.f32 %v763_v11, 0.0  ;;  %v925_v30 = vrot.slane %v897_v21, %v3297_v37  ;;  %v774_v36 = vadd.f32 %v2407_v58, %v2286_v33  ;;  %v901_v29 = vcombine.high %v897_v21, %v897_v21 }
 0x16d   : > { %v951_v1 = vpack.c.bf16 %v943_v60, %v943_v60  ;;  %v765_v2 = vpop.f32.mrf.mxu0  ;;  %v969_v14 = vsel %vm699_vm1, %v950_v61, 0  ;;  %v945_v17 = vmul.f32 %v917_v62, %v780_v4  ;;  %v952_v22 = vpack.c.bf16 %v944_v7, %v944_v7 }
 0x16e   : > { %v766_v18 = vadd.f32 %v2286_v33, %v765_v2  ;;  %2417 = vmatpush3.bf16.xpose.msra.mxu1 %v969_v14  ;;  %v946_v34 = vmul.f32 %v921_v28, %v781_v23  ;;  %v783_v40 = vmax.f32 %v771_v31, 0.0  ;;  %v929_v41 = vrot.slane %v899_v32, %v3297_v37 }
 0x16f   : > { %v1012_v19 = vsel %vm699_vm1, %v951_v1, 0  ;;  %2428 = vmatprep.subr.bf16.mxu1 %v2909_v0  ;;  %v953_v25 = vpack.c.bf16 %v945_v17, %v945_v17  ;;  %v1055_v35 = vsel %vm699_vm1, %v952_v22, 0  ;;  %v784_v42 = vmax.f32 %v774_v36, 0.0 }
 0x170   : > { %2423 = vmatpush3.bf16.xpose.msra.mxu0 %v1012_v19  ;;  %v782_v26 = vmax.f32 %v766_v18, 0.0  ;;  %v954_v33 = vpack.c.bf16 %v946_v34, %v946_v34  ;;  %v933_v43 = vrot.slane %v901_v29, %v3297_v37  ;;  %v948_v45 = vmul.f32 %v929_v41, %v783_v40 }
 0x171   : > { %2434 = vmatprep.subr.bf16.mxu0 %v2909_v0  ;;  %v1098_v39 = vsel %vm699_vm1, %v953_v25, 0 }
 0x172   : > { %v947_v38 = vmul.f32 %v925_v30, %v782_v26  ;;  %v1141_v46 = vsel %vm699_vm1, %v954_v33, 0  ;;  %v949_v47 = vmul.f32 %v933_v43, %v784_v42  ;;  %v956_v37 = vpack.c.bf16 %v948_v45, %v948_v45 }
 0x174   : > { %v955_v44 = vpack.c.bf16 %v947_v38, %v947_v38  ;;  %v957_v49 = vpack.c.bf16 %v949_v47, %v949_v47  ;;  %v1227_v50 = vsel %vm699_vm1, %v956_v37, 0 }
 0x175   : > { %2419 = vmatmul.mubr.msk.bf16.vlgmr.msra.gmra.mxu1 %vm699_vm1, %v958_v27 }
 0x176   : > { %2429 = vmatpush3.bf16.xpose.msra.mxu1 %v1055_v35  ;;  %2430 = vmatprep.mubr.msk.bf16.mxu1 %vm2910_vm0, %v2909_v0  ;;  %v1184_v48 = vsel %vm699_vm1, %v955_v44, 0  ;;  %v1270_v51 = vsel %vm699_vm1, %v957_v49, 0 }
 0x177   : > { %2425 = vmatmul.mubr.msk.bf16.vlgmr.msra.gmra.mxu0 %vm699_vm1, %v958_v27  ;;  %2440 = vmatprep.subr.bf16.mxu1 %v2909_v0 }
 0x178   : > { %2435 = vmatpush3.bf16.xpose.msra.mxu0 %v1098_v39  ;;  %2436 = vmatprep.mubr.msk.bf16.mxu0 %vm2910_vm0, %v2909_v0 }
 0x179   : > { %2446 = vmatprep.subr.bf16.mxu0 %v2909_v0 }
 0x17d   : > { %2431 = vmatmul.mubr.msk.bf16.vlgmr.msra.gmra.mxu1 %vm699_vm1, %v958_v27 }
 0x17e   : > { %2441 = vmatpush3.bf16.xpose.msra.mxu1 %v1141_v46  ;;  %2442 = vmatprep.mubr.msk.bf16.mxu1 %vm2910_vm0, %v2909_v0 }
 0x17f   : > { %2437 = vmatmul.mubr.msk.bf16.vlgmr.msra.gmra.mxu0 %vm699_vm1, %v958_v27  ;;  %2452 = vmatprep.subr.bf16.mxu1 %v2909_v0 }
 0x180   : > { %2447 = vmatpush3.bf16.xpose.msra.mxu0 %v1184_v48  ;;  %2448 = vmatprep.mubr.msk.bf16.mxu0 %vm2910_vm0, %v2909_v0 }
 0x181   : > { %2458 = vmatprep.subr.bf16.mxu0 %v2909_v0 }
 0x185   : > { %2443 = vmatmul.mubr.msk.bf16.vlgmr.msra.gmra.mxu1 %vm699_vm1, %v958_v27 }
 0x186   : > { %2453 = vmatpush3.bf16.xpose.msra.mxu1 %v1227_v50  ;;  %2454 = vmatprep.mubr.msk.bf16.mxu1 %vm2910_vm0, %v2909_v0 }
 0x187   : > { %2449 = vmatmul.mubr.msk.bf16.vlgmr.msra.gmra.mxu0 %vm699_vm1, %v958_v27  ;;  %2464 = vmatprep.subr.bf16.mxu1 %v2909_v0 }
 0x188   : > { %2459 = vmatpush3.bf16.xpose.msra.mxu0 %v1270_v51  ;;  %2460 = vmatprep.mubr.msk.bf16.mxu0 %vm2910_vm0, %v2909_v0 }
 0x189   : > { %2470 = vmatprep.subr.bf16.mxu0 %v2909_v0 }
 0x18d   : > { %2455 = vmatmul.mubr.msk.bf16.vlgmr.msra.gmra.mxu1 %vm699_vm1, %v958_v27 }
 0x18e   : > { %2466 = vmatprep.mubr.msk.bf16.mxu1 %vm2910_vm0, %v2909_v0 }
 0x18f   : > { %2461 = vmatmul.mubr.msk.bf16.vlgmr.msra.gmra.mxu0 %vm699_vm1, %v958_v27 }
 0x190   : > { %2472 = vmatprep.mubr.msk.bf16.mxu0 %vm2910_vm0, %v2909_v0 }
 0x235   : > { %v1005_v53 = vpop.f32.mrf.mxu1 }
 0x236   : > { %v1006_v55 = vadd.f32 %v1005_v53, %v963_v52 }
 0x237   : > { %v1048_v56 = vpop.f32.mrf.mxu0  ;;  %v2420_v57 = vpop.f32.mrf.mxu1 }
 0x238   : > { %v1049_v58 = vadd.f32 %v1048_v56, %v963_v52  ;;  %v1319_v60 = vadd.f32 %v2309_v54, %v1006_v55 }
 0x239   : > { %v2426_v59 = vpop.f32.mrf.mxu0  ;;  %v1008_v61 = vpop.f32.mrf.mxu1 }
 0x23a   : > { %v1320_v62 = vadd.f32 %v2309_v54, %v1049_v58  ;;  %v1328_v1 = vsel %vm1327_vm2, %v1319_v60, -inf }
 0x23b   : > { %v1051_v63 = vpop.f32.mrf.mxu0  ;;  %1329 = vmax.xlane.f32.xlu0 %v1328_v1  ;;  %v2421_v2 = vpop.f32.mrf.mxu1 }
 0x23c   : > { %v1331_v3 = vsel %vm1327_vm2, %v1320_v62, -inf }
 0x23d   : > { %1332 = vmax.xlane.f32.xlu1 %v1331_v3  ;;  %v2427_v4 = vpop.f32.mrf.mxu0  ;;  %v1091_v7 = vpop.f32.mrf.mxu1 }
 0x23e   : > { %v1092_v11 = vadd.f32 %v1091_v7, %v963_v52 }
 0x23f   : > { %v1134_v14 = vpop.f32.mrf.mxu0  ;;  %v2432_v17 = vpop.f32.mrf.mxu1 }
 0x240   : > { %v1135_v18 = vadd.f32 %v1134_v14, %v963_v52  ;;  %v1321_v20 = vadd.f32 %v2309_v54, %v1092_v11 }
 0x241   : > { %v2438_v19 = vpop.f32.mrf.mxu0  ;;  %v1094_v21 = vpop.f32.mrf.mxu1 }
 0x242   : > { %v1334_v23 = vsel %vm1327_vm2, %v1321_v20, -inf  ;;  %v1322_v25 = vadd.f32 %v2309_v54, %v1135_v18 }
 0x243   : > { %v1137_v22 = vpop.f32.mrf.mxu0  ;;  %1335 = vmax.xlane.f32.xlu1 %v1334_v23  ;;  %v2433_v26 = vpop.f32.mrf.mxu1 }
 0x244   : > { %v1337_v32 = vsel %vm1327_vm2, %v1322_v25, -inf }
 0x245   : > { %v2439_v27 = vpop.f32.mrf.mxu0  ;;  %v1177_v28 = vpop.f32.mrf.mxu1 }
 0x246   : > { %v1178_v30 = vadd.f32 %v1177_v28, %v963_v52 }
 0x247   : > { %v1220_v31 = vpop.f32.mrf.mxu0  ;;  %1338 = vmax.xlane.f32.xlu1 %v1337_v32  ;;  %v2444_v35 = vpop.f32.mrf.mxu1 }
 0x248   : > { %v1221_v34 = vadd.f32 %v1220_v31, %v963_v52  ;;  %v1323_v29 = vadd.f32 %v2309_v54, %v1178_v30 }
 0x249   : > { %v2450_v36 = vpop.f32.mrf.mxu0  ;;  %v1180_v38 = vpop.f32.mrf.mxu1 }
 0x24a   : > { %v1340_v40 = vsel %vm1327_vm2, %v1323_v29, -inf  ;;  %v1324_v41 = vadd.f32 %v2309_v54, %v1221_v34 }
 0x24b   : > { %v1223_v39 = vpop.f32.mrf.mxu0  ;;  %1341 = vmax.xlane.f32.xlu1 %v1340_v40  ;;  %v2445_v33 = vpop.f32.mrf.mxu1 }
 0x24c   : > { %v1343_v46 = vsel %vm1327_vm2, %v1324_v41, -inf }
 0x24d   : > { %v2451_v42 = vpop.f32.mrf.mxu0  ;;  %v1263_v43 = vpop.f32.mrf.mxu1 }
 0x24e   : > { %v1264_v44 = vadd.f32 %v1263_v43, %v963_v52  ;;  %v1430_v43 = vsel %vm1428_vm3, %v3238_v5, 0 }
 0x24f   : > { %v1306_v45 = vpop.f32.mrf.mxu0  ;;  %1344 = vmax.xlane.f32.xlu1 %v1343_v46  ;;  %v2456_v48 = vpop.f32.mrf.mxu1  ;;  %2465 = vmatpush3.bf16.msra.mxu1 %v1430_v43  ;;  %v1476_v46 = vsel %vm1428_vm3, %v3241_v6, 0  ;;  %v1522_v6 = vsel %vm1428_vm3, %v3246_v8, 0 }
 0x250   : > { %v1307_v47 = vadd.f32 %v1306_v45, %v963_v52  ;;  %v1325_v37 = vadd.f32 %v2309_v54, %v1264_v44  ;;  %2476 = vmatprep.subr.bf16.mxu1 %v2909_v0  ;;  %2471 = vmatpush3.bf16.msra.mxu0 %v1476_v46 }
 0x251   : > { %v2462_v49 = vpop.f32.mrf.mxu0  ;;  %v1266_v50 = vpop.f32.mrf.mxu1  ;;  %2482 = vmatprep.subr.bf16.mxu0 %v2909_v0 }
 0x252   : > { %v1346_v51 = vsel %vm1327_vm2, %v1325_v37, -inf  ;;  %v1326_v55 = vadd.f32 %v2309_v54, %v1307_v47 }
 0x253   : > { %v1309_v53 = vpop.f32.mrf.mxu0  ;;  %1347 = vmax.xlane.f32.xlu1 %v1346_v51  ;;  %v2457_v56 = vpop.f32.mrf.mxu1 }
 0x254   : > { %v1349_v58 = vsel %vm1327_vm2, %v1326_v55, -inf }
 0x255   : > { %v2463_v57 = vpop.f32.mrf.mxu0 }
 0x257   : > { %1350 = vmax.xlane.f32.xlu1 %v1349_v58 }
 0x2c4   : > { %v1330_v59 = vpop.xlane.xlu0 %1329 }
 0x2c5   : > { %v1352_v61 = vsub.f32 %v1319_v60, %v1330_v59  ;;  %v1568_v59 = vsel %vm1428_vm3, %v3249_v9, 0 }
 0x2c6   : > { %v1333_v63 = vpop.xlane.xlu1 %1332 }
 0x2c7   : > { %v1353_v1 = vsub.f32 %v1320_v62, %v1333_v63  ;;  %v1360_v52 = vmul.f32 1.442695, %v1352_v61 }
 0x2c9   : > { %v1362_v2 = vmul.f32 1.442695, %v1353_v1  ;;  %2658 = vpow2.f32 %v1360_v52  ;;  %v1614_v52 = vsel %vm1428_vm3, %v3252_v10, 0 }
 0x2cb   : > { %2660 = vpow2.f32 %v1362_v2 }
 0x2cc   : > { %v1336_v3 = vpop.xlane.xlu1 %1335 }
 0x2cd   : > { %v1354_v4 = vsub.f32 %v1321_v20, %v1336_v3 }
 0x2cf   : > { %v1364_v7 = vmul.f32 1.442695, %v1354_v4 }
 0x2d0   : > { %v1339_v11 = vpop.xlane.xlu1 %1338 }
 0x2d1   : > { %2662 = vpow2.f32 %v1364_v7  ;;  %v1355_v54 = vsub.f32 %v1322_v25, %v1339_v11  ;;  %v1660_v7 = vsel %vm1428_vm3, %v3257_v12, 0 }
 0x2d3   : > { %v1366_v14 = vmul.f32 1.442695, %v1355_v54 }
 0x2d4   : > { %v1342_v17 = vpop.xlane.xlu1 %1341 }
 0x2d5   : > { %2664 = vpow2.f32 %v1366_v14  ;;  %v1356_v18 = vsub.f32 %v1323_v29, %v1342_v17  ;;  %v1706_v14 = vsel %vm1428_vm3, %v3267_v15, 0 }
 0x2d6   : > { %v2659_v19 = vpop.eup %2658 }
 0x2d7   : > { %v1368_v21 = vmul.f32 1.442695, %v1356_v18  ;;  %v1376_v60 = vsel %vm1327_vm2, %v2659_v19, 0.0 }
 0x2d8   : > { %v2661_v22 = vpop.eup %2660  ;;  %v1345_v62 = vpop.xlane.xlu1 %1344  ;;  %1377 = vadd.xlane.f32.xlu1 %v1376_v60 }
 0x2d9   : > { %2666 = vpow2.f32 %v1368_v21  ;;  %v1357_v23 = vsub.f32 %v1324_v41, %v1345_v62  ;;  %v1379_v20 = vsel %vm1327_vm2, %v2661_v22, 0.0 }
 0x2db   : > { %v1370_v26 = vmul.f32 1.442695, %v1357_v23  ;;  %v2648_v23 = vld [vmem:[%s3536_s9 + $0x18] sm:$0xff]  }
 0x2dc   : > { %1380 = vadd.xlane.f32.xlu1 %v1379_v20  ;;  %v1348_v27 = vpop.xlane.xlu1 %1347  ;;  %v2649_v20 = vld [vmem:[%s3536_s9 + $0x10] sm:$0xff]  }
 0x2dd   : > { %2668 = vpow2.f32 %v1370_v26  ;;  %v1358_v25 = vsub.f32 %v1325_v37, %v1348_v27  ;;  %v2651_v26 = vld [vmem:[%s3538_s11 + $0x8] sm:$0xff]  }
 0x2de   : > { %v2663_v28 = vpop.eup %2662  ;;  %v2650_v27 = vld [vmem:[%s3536_s9 + $0x8] sm:$0xff]  }
 0x2df   : > { %v1372_v30 = vmul.f32 1.442695, %v1358_v25  ;;  %v1382_v31 = vsel %vm1327_vm2, %v2663_v28, 0.0 }
 0x2e0   : > { %1383 = vadd.xlane.f32.xlu0 %v1382_v31  ;;  %v1351_v32 = vpop.xlane.xlu1 %1350 }
 0x2e1   : > { %2670 = vpow2.f32 %v1372_v30  ;;  %v1359_v34 = vsub.f32 %v1326_v55, %v1351_v32 }
 0x2e2   : > { %v2665_v35 = vpop.eup %2664 }
 0x2e3   : > { %v1374_v36 = vmul.f32 1.442695, %v1359_v34  ;;  %v1385_v29 = vsel %vm1327_vm2, %v2665_v35, 0.0 }
 0x2e4   : > { %1386 = vadd.xlane.f32.xlu1 %v1385_v29 }
 0x2e5   : > { %2672 = vpow2.f32 %v1374_v36 }
 0x2e6   : > { %v3362_v38 = vpop.eup %2666 }
 0x2e7   : > { %v1388_v39 = vsel %vm1327_vm2, %v3362_v38, 0.0 }
 0x2e8   : > { %1389 = vadd.xlane.f32.xlu0 %v1388_v39 }
 0x2ea   : > { %v3366_v40 = vpop.eup %2668 }
 0x2eb   : > { %v1391_v41 = vsel %vm1327_vm2, %v3366_v40, 0.0 }
 0x2ec   : > { %1392 = vadd.xlane.f32.xlu1 %v1391_v41 }
 0x2ee   : > { %v3370_v33 = vpop.eup %2670 }
 0x2ef   : > { %v1394_v42 = vsel %vm1327_vm2, %v3370_v33, 0.0 }
 0x2f0   : > { %1395 = vadd.xlane.f32.xlu0 %v1394_v42 }
 0x2f2   : > { %v3377_v44 = vpop.eup %2672 }
 0x2f3   : > { %v1397_v45 = vsel %vm1327_vm2, %v3377_v44, 0.0 }
 0x2f4   : > { %1398 = vadd.xlane.f32.xlu1 %v1397_v45 }
 0x361   : > { %v1378_v47 = vpop.xlane.xlu1 %1377 }
 0x362   : > { %2674 = vrcp.f32 %v1378_v47 }
 0x365   : > { %v1381_v48 = vpop.xlane.xlu1 %1380 }
 0x366   : > { %2676 = vrcp.f32 %v1381_v48 }
 0x369   : > { %v1384_v5 = vpop.xlane.xlu0 %1383 }
 0x36a   : > { %2678 = vrcp.f32 %v1384_v5 }
 0x36d   : > { %v1387_v37 = vpop.xlane.xlu1 %1386 }
 0x36e   : > { %2680 = vrcp.f32 %v1387_v37  ;;  %v2653_v37 = vld [vmem:[%s3538_s11] sm:$0xff]  }
 0x36f   : > { %v2675_v49 = vpop.eup %2674 }
 0x370   : > { %v1408_v50 = vmul.f32 %v2675_v49, %v2659_v19  ;;  %v1752_v19 = vsel %vm1428_vm3, %v3270_v16, 0 }
 0x371   : > { %v1390_v51 = vpop.xlane.xlu0 %1389 }
 0x372   : > { %2682 = vrcp.f32 %v1390_v51  ;;  %v1416_v53 = vpack.c.bf16 %v1408_v50, %v1408_v50 }
 0x373   : > { %v2677_v55 = vpop.eup %2676 }
 0x374   : > { %2467 = vmatmul.mubr.msk.bf16.vlgmr.msra.gmra.mxu1 %vm1424_vm4, %v1416_v53  ;;  %v1409_v56 = vmul.f32 %v2677_v55, %v2661_v22 }
 0x375   : > { %v1393_v57 = vpop.xlane.xlu1 %1392  ;;  %2477 = vmatpush3.bf16.msra.mxu1 %v1522_v6  ;;  %2478 = vmatprep.mubr.msk.bf16.mxu1 %vm2910_vm0, %v2909_v0  ;;  %v2914_v6 = vmov 1934713408  }
 0x376   : > { %2684 = vrcp.f32 %v1393_v57  ;;  %v1417_v58 = vpack.c.bf16 %v1409_v56, %v1409_v56  ;;  %2488 = vmatprep.subr.bf16.mxu1 %v2909_v0  ;;  %v1828_v55 = vunpack.c.l.s4 %v2914_v6 }
 0x377   : > { %v2679_v61 = vpop.eup %2678 }
 0x378   : > { %2473 = vmatmul.mubr.msk.bf16.vlgmr.msra.gmra.mxu0 %vm1424_vm4, %v1417_v58  ;;  %v1410_v8 = vmul.f32 %v2679_v61, %v2663_v28 }
 0x379   : > { %v1396_v63 = vpop.xlane.xlu0 %1395  ;;  %2483 = vmatpush3.bf16.msra.mxu0 %v1568_v59  ;;  %2484 = vmatprep.mubr.msk.bf16.mxu0 %vm2910_vm0, %v2909_v0 }
 0x37a   : > { %2686 = vrcp.f32 %v1396_v63  ;;  %v1418_v1 = vpack.c.bf16 %v1410_v8, %v1410_v8  ;;  %2494 = vmatprep.subr.bf16.mxu0 %v2909_v0  ;;  %v2652_v63 = vld [vmem:[%s3536_s9] sm:$0xff]  }
 0x37b   : > { %v2681_v2 = vpop.eup %2680 }
 0x37c   : > { %2479 = vmatmul.mubr.msk.bf16.vlgmr.msra.gmra.mxu1 %vm1424_vm4, %v1418_v1  ;;  %v1411_v9 = vmul.f32 %v2681_v2, %v2665_v35  ;;  %v1829_v2 = vunpack.c.0.s8 %v1828_v55 }
 0x37d   : > { %v1399_v3 = vpop.xlane.xlu1 %1398  ;;  %2489 = vmatpush3.bf16.msra.mxu1 %v1614_v52  ;;  %2490 = vmatprep.mubr.msk.bf16.mxu1 %vm2910_vm0, %v2909_v0 }
 0x37e   : > { %2688 = vrcp.f32 %v1399_v3  ;;  %v1419_v4 = vpack.c.bf16 %v1411_v9, %v1411_v9  ;;  %2500 = vmatprep.subr.bf16.mxu1 %v2909_v0 }
 0x37f   : > { %v2683_v11 = vpop.eup %2682 }
 0x380   : > { %2485 = vmatmul.mubr.msk.bf16.vlgmr.msra.gmra.mxu0 %vm1424_vm4, %v1419_v4  ;;  %v1412_v10 = vmul.f32 %v2683_v11, %v3362_v38 }
 0x381   : > { %2495 = vmatpush3.bf16.msra.mxu0 %v1660_v7  ;;  %2496 = vmatprep.mubr.msk.bf16.mxu0 %vm2910_vm0, %v2909_v0 }
 0x382   : > { %v1420_v54 = vpack.c.bf16 %v1412_v10, %v1412_v10  ;;  %2506 = vmatprep.subr.bf16.mxu0 %v2909_v0 }
 0x383   : > { %v2685_v17 = vpop.eup %2684 }
 0x384   : > { %2491 = vmatmul.mubr.msk.bf16.vlgmr.msra.gmra.mxu1 %vm1424_vm4, %v1420_v54  ;;  %v1413_v12 = vmul.f32 %v2685_v17, %v3366_v40  ;;  %v1832_v17 = vsub.s32 %v1829_v2, %v3287_v24 }
 0x385   : > { %2501 = vmatpush3.bf16.msra.mxu1 %v1706_v14  ;;  %2502 = vmatprep.mubr.msk.bf16.mxu1 %vm2910_vm0, %v2909_v0 }
 0x386   : > { %v1421_v18 = vpack.c.bf16 %v1413_v12, %v1413_v12  ;;  %2512 = vmatprep.subr.bf16.mxu1 %v2909_v0 }
 0x387   : > { %v2687_v21 = vpop.eup %2686 }
 0x388   : > { %2497 = vmatmul.mubr.msk.bf16.vlgmr.msra.gmra.mxu0 %vm1424_vm4, %v1421_v18  ;;  %v1414_v15 = vmul.f32 %v2687_v21, %v3370_v33 }
 0x389   : > { %2507 = vmatpush3.bf16.msra.mxu0 %v1752_v19  ;;  %2508 = vmatprep.mubr.msk.bf16.mxu0 %vm2910_vm0, %v2909_v0 }
 0x38a   : > { %v1422_v60 = vpack.c.bf16 %v1414_v15, %v1414_v15  ;;  %2524 = vmatprep.subr.bf16.mxu0 %v2909_v0 }
 0x38b   : > { %v2689_v22 = vpop.eup %2688 }
 0x38c   : > { %2503 = vmatmul.mubr.msk.bf16.vlgmr.msra.gmra.mxu1 %vm1424_vm4, %v1422_v60  ;;  %v1415_v62 = vmul.f32 %v2689_v22, %v3377_v44  ;;  %v2913_v44 = vmov 1983009808  }
 0x38d   : > { %2520 = vmatprep.mubr.msk.bf16.mxu1 %vm2910_vm0, %v2909_v0  ;;  %2513 = vmatpush3.bf16.msra.mxu1 %v2648_v23  ;;  %v1796_v45 = vunpack.c.l.s4 %v2913_v44 }
 0x38e   : > { %v1423_v16 = vpack.c.bf16 %v1415_v62, %v1415_v62  ;;  %2514 = vmatprep.subr.bf16.mxu1 %v2909_v0 }
 0x38f   : > { %v1797_v49 = vunpack.c.0.s8 %v1796_v45 }
 0x390   : > { %2509 = vmatmul.mubr.msk.bf16.vlgmr.msra.gmra.mxu0 %vm1424_vm4, %v1423_v16 }
 0x391   : > { %2528 = vmatprep.mubr.msk.bf16.mxu0 %vm2910_vm0, %v2909_v0  ;;  %2525 = vmatpush3.bf16.msra.mxu0 %v2651_v26  ;;  %v1800_v59 = vsub.s32 %v1797_v49, %v3287_v24 }
 0x392   : > { %2526 = vmatprep.subr.bf16.mxu0 %v2909_v0  ;;  %2515 = vmatpush3.bf16.msra.mxu1 %v2649_v20  ;;  %v2654_v20 = vld [vmem:[#allocation8 + $0x8] sm:$0xff]  }
 0x393   : > { %2516 = vmatprep.subr.bf16.mxu1 %v2909_v0 }
 0x395   : > { %2527 = vmatpush3.bf16.msra.mxu0 %v2653_v37 }
 0x396   : > { %2517 = vmatpush3.bf16.msra.mxu1 %v2650_v27  ;;  %2532 = vmatprep.subr.bf16.mxu0 %v2909_v0 }
 0x397   : > { %2518 = vmatprep.subr.bf16.mxu1 %v2909_v0 }
 0x398   : > { %2529 = vmatmul.mubr.msk.bf16.vlgmr.msra.gmra.mxu0 %vm699_vm1, %v3260_v13 }
 0x399   : > { %2536 = vmatprep.mubr.msk.bf16.mxu0 %vm2910_vm0, %v2909_v0  ;;  %2533 = vmatpush3.bf16.msra.mxu0 %v2654_v20 }
 0x39a   : > { %2519 = vmatpush3.bf16.msra.mxu1 %v2652_v63  ;;  %2534 = vmatprep.subr.bf16.mxu0 %v2909_v0 }
 0x39b   : > { %2540 = vmatprep.subr.bf16.mxu1 %v2909_v0 }
 0x434   : > { %v1466_v25 = vpop.f32.mrf.mxu1 }
 0x436   : > { %v2468_v28 = vpop.f32.mrf.mxu1 }
 0x437   : > { %v2655_v28 = vld [vmem:[#allocation8] sm:$0xff]  }
 0x438   : > { %v1469_v30 = vpop.f32.mrf.mxu1  ;;  %v1512_v31 = vpop.f32.mrf.mxu0  ;;  %2535 = vmatpush3.bf16.msra.mxu0 %v2655_v28 }
 0x439   : > { %v2324_v30 = vld [vmem:[%s3599_s21] ss:$0 sm:$0xff]  ;;  %s3605_s21 = smov %s3604_s26 }
 0x43a   : > { %v2469_v32 = vpop.f32.mrf.mxu1  ;;  %v2474_v34 = vpop.f32.mrf.mxu0 }
 0x43c   : > { %v1515_v35 = vpop.f32.mrf.mxu0  ;;  %v1558_v36 = vpop.f32.mrf.mxu1 }
 0x43d   : > { %v1794_v58 = vcombine.low %v1466_v25, %v1558_v36 }
 0x43e   : > { %v2475_v29 = vpop.f32.mrf.mxu0  ;;  %v2480_v38 = vpop.f32.mrf.mxu1 }
 0x43f   : > { %v1801_v4 = vrot.slane %v1794_v58, %v1800_v59 }
 0x440   : > { %v1561_v39 = vpop.f32.mrf.mxu1  ;;  %v1604_v40 = vpop.f32.mrf.mxu0 }
 0x441   : > { %v1802_v53 = vcombine.low %v1512_v31, %v1604_v40  ;;  %v2318_v31 = vld [vmem:[%s3600_s20] ss:$0 sm:$0xff]  ;;  %s2824_s20 = scalar_lea.vmem %s3486_s29, 128 }
 0x442   : > { %v2481_v41 = vpop.f32.mrf.mxu1  ;;  %v2486_v33 = vpop.f32.mrf.mxu0  ;;  %p2825_p1 = scmp.ne.s32.totalorder %s3486_s29, %s2824_s20  ;;  %p2832_p12 = scmp.lt.s32.totalorder %s2830_s0, %s2824_s20 }
 0x443   : > { %v1809_v1 = vrot.slane %v1802_v53, %v1800_v59  ;;  %v2656_v41 = vld [vmem:[#allocation10 + $0x8] sm:$0xff]   ;;  %v2657_v33 = vld [vmem:[#allocation10] sm:$0xff]  }
 0x444   : > { %v1607_v42 = vpop.f32.mrf.mxu0  ;;  %v1650_v43 = vpop.f32.mrf.mxu1  ;;  %p2826_p13 = pnand %p2825_p1, %p3606_p10  ;;  %p2833_p4 = por %p2832_p12, %p2831_p3 }
 0x445   : > { %v1826_v10 = vcombine.low %v1801_v4, %v1809_v1  ;;  %v2328_v42 = vld [vmem:[%s3601_s22] ss:$0 sm:$0xff] }
 0x446   : > { %v2487_v46 = vpop.f32.mrf.mxu0  ;;  %v2492_v47 = vpop.f32.mrf.mxu1  ;;  %p2827_p11 = pneg %p2826_p13 }
 0x447   : > { %v1833_v21 = vrot.slane %v1826_v10, %v1832_v17 }
 0x448   : > { %v1653_v48 = vpop.f32.mrf.mxu1  ;;  %v1696_v5 = vpop.f32.mrf.mxu0  ;;  %p2834_p6 = pnand %p2833_p4, %p2827_p11 }
 0x44a   : > { %v2493_v50 = vpop.f32.mrf.mxu1  ;;  %v2498_v51 = vpop.f32.mrf.mxu0 }
 0x44c   : > { %v1699_v56 = vpop.f32.mrf.mxu0  ;;  %v1742_v57 = vpop.f32.mrf.mxu1 }
 0x44d   : > { %v1810_v52 = vcombine.low %v1650_v43, %v1742_v57 }
 0x44e   : > { %v2499_v61 = vpop.f32.mrf.mxu0  ;;  %v2504_v8 = vpop.f32.mrf.mxu1 }
 0x44f   : > { %v1817_v54 = vrot.slane %v1810_v52, %v1800_v59 }
 0x450   : > { %v1745_v9 = vpop.f32.mrf.mxu1  ;;  %v1788_v3 = vpop.f32.mrf.mxu0 }
 0x451   : > { %v1818_v7 = vcombine.low %v1696_v5, %v1788_v3 }
 0x452   : > { %v2505_v13 = vpop.f32.mrf.mxu1  ;;  %v2510_v11 = vpop.f32.mrf.mxu0 }
 0x453   : > { %v1825_v14 = vrot.slane %v1818_v7, %v1800_v59 }
 0x454   : > { %v1791_v12 = vpop.f32.mrf.mxu0 }
 0x455   : > { %v1834_v18 = vcombine.low %v1817_v54, %v1825_v14 }
 0x456   : > { %v2511_v19 = vpop.f32.mrf.mxu0 }
 0x457   : > { %v1841_v15 = vrot.slane %v1834_v18, %v1832_v17 }
 0x458   : > { %v1990_v26 = vpop.f32.mrf.mxu0 }
 0x459   : > { %v1843_v60 = vcombine.high %v1833_v21, %v1841_v15  ;;  %v1842_v22 = vcombine.low %v1833_v21, %v1841_v15  ;;  %v1991_v32 = vadd.f32 %v2324_v30, %v1990_v26 }
 0x45a   : > { %v2530_v24 = vpop.f32.mrf.mxu0 }
 0x45b   : > { %1845 = vrot.lane.b32.xlu0 %v1843_v60, %s2915_s1 }
 0x45c   : > { %v1993_v27 = vpop.f32.mrf.mxu0 }
 0x45e   : > { %v2531_v25 = vpop.f32.mrf.mxu0 }
 0x4cd   : > { %v1846_v62 = vpop.permute.xlu0 %1845 }
 0x4ce   : > { %v1848_v16 = vsel %vm699_vm1, %v1842_v22, %v1846_v62 }
 0x4cf   : > { %v1849_v23 = vpack.c.bf16 %v1848_v16, %v1848_v16 }
 0x4d1   : > { %2521 = vmatmul.mubr.msk.bf16.vlgmr.msra.gmra.mxu1 %vm1889_vm5, %v1849_v23 }
 0x4d2   : > { %2544 = vmatprep.mubr.msk.bf16.mxu1 %vm2910_vm0, %v2909_v0  ;;  %2541 = vmatpush3.bf16.msra.mxu1 %v2656_v41 }
 0x4d3   : > { %2542 = vmatprep.subr.bf16.mxu1 %v2909_v0  ;;  %v2332_v0 = vld [vmem:[%s3603_s24] ss:$0 sm:$0xff] }
 0x4d6   : > { %2543 = vmatpush3.bf16.msra.mxu1 %v2657_v33 }
 0x591   : > { %v1927_v34 = vpop.f32.mrf.mxu1 }
 0x592   : > { %v1928_v35 = vadd.f32 %v2318_v31, %v1927_v34 }
 0x593   : > { %v2522_v36 = vpop.f32.mrf.mxu1 }
 0x594   : > { %v1996_v29 = vmul.f32 %v1991_v32, %v1928_v35 }
 0x595   : > { %v1930_v38 = vpop.f32.mrf.mxu1 }
 0x596   : > { %v1997_v39 = vpack.c.bf16 %v1996_v29, %v1996_v29 }
 0x597   : > { %v2523_v40 = vpop.f32.mrf.mxu1 }
 0x598   : > { %2537 = vmatmul.mubr.msk.bf16.vlgmr.msra.gmra.mxu0 %vm699_vm1, %v1997_v39 }
 0x658   : > { %v2058_v43 = vpop.f32.mrf.mxu0 }
 0x659   : > { %v2059_v44 = vadd.f32 %v2328_v42, %v2058_v43 }
 0x65a   : > { %v2538_v45 = vpop.f32.mrf.mxu0 }
 0x65b   : > { %v2064_v46 = vmax.f32 %v2059_v44, 0.0 }
 0x65c   : > { %v2061_v47 = vpop.f32.mrf.mxu0 }
 0x65d   : > { %v2065_v48 = vpack.c.bf16 %v2064_v46, %v2064_v46 }
 0x65e   : > { %v2539_v5 = vpop.f32.mrf.mxu0 }
 0x65f   : > { %2545 = vmatmul.mubr.msk.bf16.vlgmr.msra.gmra.mxu1 %vm699_vm1, %v2065_v48 }
 0x71f   : > { %v2126_v37 = vpop.f32.mrf.mxu1 }
 0x720   : > { %v2127_v49 = vadd.f32 %v2332_v0, %v2126_v37 }
 0x721   : > { %v2546_v50 = vpop.f32.mrf.mxu1 }
 0x722   : > { %2132 = vst [vmem:[%s644_s14] sm:$0xff] %v2127_v49 }
 0x723   : > { %v2129_v51 = vpop.f32.mrf.mxu1 }
 0x724   : > { %2837 = shalt.err (!%p2834_p6)
}
 0x725   : > { %s2838_s22 = scalar_lea.hbm %s3484_s10, 128  ;;  %s2842_s30 = scalar_lea.hbm %s3605_s21, 256 }
 0x726   : > { %p2839_p0 = scmp.ne.s32.totalorder %s3484_s10, %s2838_s22  ;;  %p2843_p2 = scmp.lt.s32.totalorder %s3484_s10, %s3605_s21 }
 0x727   : > { %p2844_p9 = scmp.lt.s32.totalorder %s2842_s30, %s2838_s22 }
 0x728   : > { %p2840_p5 = pnand %p2839_p0, %p3606_p10 }
 0x729   : > { %p2845_p7 = por %p2844_p9, %p2843_p2 }
 0x72a   : > { %p2841_p8 = pneg %p2840_p5 }
 0x72c   : > { %p2846_p1 = pnand %p2845_p7, %p2841_p8 }
 0x72e   : > { %2849 = shalt.err (!%p2846_p1)
}
 0x72f   : > { %2564 = dma.vmem_to_hbm [thread:$0]  (%p3606_p10), %s3486_s29, 128, %s3484_s10, %s2134_s18   ;;  %v2547_v53 = vpop.f32.mrf.mxu1 }
 0x730 PF: > { %s3607_s16 = sld [smem:[#allocation17_spill]]  ;;  %p3610_p11 = scmp.ge.s32.totalorder %s2900_s27, 2 }
 0x731   : > { %s3608_s14 = sld [smem:[#allocation19_spill]] }
 0x736   : > { %s2159_s1 = sand.u32 1, %s3607_s16  }
 0x737   : > { %p3609_p13 = scmp.ne.s32.totalorder %s3608_s14, 0  ;;  %s2160_s7 = scalar_lea.sflag [#allocation4], %s2159_s1 }
 0x739   : > { %p2584_p3 = pnand %p3610_p11, %p3609_p13 }
 0x73b   : > { %p2585_p12 = pneg %p2584_p3 }
 0x73d   : > { %2883 = dma.done.wait (%p2585_p12), %s2160_s7, 128  }
 0x73e   : > { %2885 = vsyncadd (%p2585_p12), %s2160_s7, 4294967168  ;;  %s3611_s27 = sld [smem:[#allocation20_spill]]  ;;  %s3614_s24 = smov %s2892_s25 }
 0x73f   : > { %s3612_s26 = sld [smem:[#allocation18_spill]] }
 0x740   : > { %s3613_s13 = sld [smem:[#allocation21_spill]] }
 0x744   : > { %p34_p4 = scmp.ge.s32.totalorder %s3611_s27, 4  }
 0x745   : > { %s3615_s25 = smov %s3612_s26 }
 0x746   : > { %s3616_s26 = smov %s3613_s13  ;;  %36 = sbr.rel (!%p34_p4) target bundleno = 19 (0x13), region = 158 }
 0x74b   :  { %2165 = vsyncpa [#allocation3], 1 }
 0x74c   :  { %2167 = vsyncpa [#allocation3 + $0x1], 1 }
 0x74d   :  { %2168 = vsyncpa [#allocation6], 1 }
 0x74e   :  { %2170 = vsyncpa [#allocation6 + $0x1], 1 }
 0x74f   :  { %2171 = vsyncpa [#allocation9], 1 }
 0x750   :  { %2172 = vsyncpa [#allocation4], 1 }
 0x751   :  { %2174 = vsyncpa [#allocation4 + $0x1], 1 }

</bundles_post_ra>
